<compile_context>
chip_gen: v7x
topology: tpu7x:2x2x1
jax: 0.10.0
libtpu: 0.0.40
codegen_flags: <defaults>
</compile_context>

<pallas_src>
import functools

import jax
import jax.numpy as jnp
import numpy as np
from jax.experimental import pallas as pl
from jax.experimental.pallas import tpu as pltpu

EPS = 1e-5
LANE = 128
SUBLANE = 8


def _round_up(x, m):
    return ((x + m - 1) // m) * m


def _vmem_limits():
    """Chip-aware VMEM limit + per-step tile budget (bytes)."""
    try:
        cap = int(pltpu.get_tpu_info().vmem_capacity_bytes)
    except Exception:                     # fallback: v7x-safe 64 MiB per core
        cap = 64 << 20
    limit = min((cap * 3) // 4, 96 << 20)   # ~48 MiB on v7x, ~96 MiB on v5e/v6e
    budget = (limit * 3) // 4               # headroom for compiler scratch
    return limit, budget


def _pick_block_h(N, HO, WO, Ci_pad, C_pad, in_isz, budget):
    """Largest TH (divisor of HO, TH*WO % 8 == 0) whose working set fits VMEM."""
    slab = 8 * (HO + 1) * WO * Ci_pad * in_isz          # per-sample phase planes
    wts = 16 * Ci_pad * C_pad * in_isz
    fixed = 2 * slab + 2 * wts                          # double-buffered inputs

    def fits(th):
        rows = th * WO
        return fixed + 2 * rows * C_pad * in_isz + 2 * rows * C_pad * 4 <= budget

    cands = [d for d in range(HO, 0, -1)
             if HO % d == 0 and ((d * WO) % SUBLANE == 0 or d == HO)]
    th = next((d for d in cands if fits(d)), cands[-1])
    # v7x has 2 TensorCores: keep the parallel grid at >= 2 tiles if batch == 1.
    if N * (HO // th) < 2:
        smaller = [d for d in cands if d < th and fits(d)]
        if smaller:
            th = smaller[0]
    return th


def _pick_spatial_tile(S, C_pad, budget):
    """Largest pass-2 spatial tile: divisor of S, multiple of 128 (or == S)."""
    def fits(t):
        # bf16 in (x2 buf) + f32 out (x2 buf) + transpose/upcast temporaries
        return t * C_pad * (2 * 2 + 2 * 4 + 2 * 4) <= budget
    cands = [d for d in range(S, 0, -1)
             if S % d == 0 and (d % LANE == 0 or d == S)]
    return next((d for d in cands if fits(d)), cands[-1])


# ---------- pass 1: conv as 16 shifted matmuls + streaming BN stats ---------------
def _conv_stats_kernel(xpl_ref, w_ref, y_ref, ssum_ref, ssq_ref, *, th, wo):
    # xpl_ref : (1, 8, (HO+1)*WO, Ci_pad)  per-sample phase planes (resident per n)
    # w_ref   : (8, 2, Ci_pad, C_pad)      tap (kh=2a+ph, kw) at [ph*4+kw, a]
    # y_ref   : (1, th*wo, C_pad)          conv output tile (compute dtype)
    # ssum/ssq: (1, 1, 1, C_pad)           f32 partial BN statistics
    rows = th * wo
    row0 = pl.program_id(1) * rows
    prec = jax.lax.Precision.HIGHEST if xpl_ref.dtype == jnp.float32 else None
    acc = None
    for p in range(8):                     # p = ph*4 + kw
        for a in range(2):                 # kh = 2*a + ph
            start = row0 + a * wo
            if wo % SUBLANE == 0:
                start = pl.multiple_of(start, SUBLANE)
            lhs = xpl_ref[0, p, pl.ds(start, rows), :]          # (rows, Ci_pad)
            part = jnp.dot(lhs, w_ref[p, a],
                           preferred_element_type=jnp.float32, precision=prec)
            acc = part if acc is None else acc + part
    y_ref[0] = acc.astype(y_ref.dtype)
    # f32 statistics are taken before any down-cast of y
    ssum_ref[0, 0] = jnp.sum(acc, axis=0, keepdims=True)
    ssq_ref[0, 0] = jnp.sum(acc * acc, axis=0, keepdims=True)


# ---------- pass 2: folded BN + ReLU, transposed in-kernel to channels-first ------
def _bn_relu_nchw_kernel(y_ref, scale_ref, shift_ref, o_ref):
    y = y_ref[0].astype(jnp.float32)                            # (T2, C_pad)
    z = jnp.maximum(y * scale_ref[...] + shift_ref[...], 0.0)
    o_ref[0] = z.T                                              # (C_pad, T2)


def _block_forward_impl(x_nchw, w_oihw, bias, gamma, beta, *,
                        compute_dtype=jnp.bfloat16, block_h=None):
    """x_nchw: (N, C_in, H, W) f32. Returns (N, C_out, H//2, W//2) f32."""
    del bias  # conv bias cancels exactly under training-mode BatchNorm
    N, C_in, H, W = x_nchw.shape
    C_out, _, KH, KW = w_oihw.shape
    assert (KH, KW) == (4, 4) and H % 2 == 0 and W % 2 == 0
    HO, WO = H // 2, W // 2
    S = HO * WO
    M = N * S

    in_isz = jnp.dtype(compute_dtype).itemsize
    Ci_pad = _round_up(C_in, SUBLANE)
    C_pad = _round_up(C_out, LANE)

    vmem_limit, budget = _vmem_limits()
    if block_h is None:
        TH = _pick_block_h(N, HO, WO, Ci_pad, C_pad, in_isz, budget)
    else:
        assert HO % block_h == 0 and ((block_h * WO) % SUBLANE == 0 or block_h == HO)
        TH = block_h
    n_ht = HO // TH
    T2 = _pick_spatial_tile(S, C_pad, budget)
    n_st = S // T2
    P = (HO + 1) * WO                                   # rows per phase plane

    # ---- host prep: one fused pass over x (reflect pad + phase split, ~2x dup) ----
    x_pad = jnp.pad(x_nchw, ((0, 0), (0, 0), (1, 1), (1, 1)), mode="reflect")
    x_nhwc = jnp.transpose(x_pad, (0, 2, 3, 1))         # (N, H+2, W+2, C_in)
    planes = [x_nhwc[:, ph::2, kw:kw + 2 * WO:2, :]     # (N, HO+1, WO, C_in)
              for ph in (0, 1) for kw in range(KW)]
    xpl = jnp.stack(planes, axis=1).reshape(N, 8, P, C_in)
    xpl = jnp.pad(xpl, ((0, 0), (0, 0), (0, 0), (0, Ci_pad - C_in)))
    xpl = xpl.astype(compute_dtype)

    w_taps = jnp.stack(
        [jnp.stack([jnp.transpose(w_oihw[:, :, 2 * a + ph, kw], (1, 0))
                    for a in (0, 1)], axis=0)
         for ph in (0, 1) for kw in range(KW)], axis=0)  # (8, 2, C_in, C_out)
    w_taps = jnp.pad(w_taps, ((0, 0), (0, 0),
                              (0, Ci_pad - C_in), (0, C_pad - C_out)))
    w_taps = w_taps.astype(compute_dtype)

    g_pad = jnp.pad(gamma.astype(jnp.float32), (0, C_pad - C_out))
    b_pad = jnp.pad(beta.astype(jnp.float32), (0, C_pad - C_out))

    cparams = pltpu.CompilerParams(dimension_semantics=("parallel", "parallel"),
                                   vmem_limit_bytes=int(vmem_limit))

    # ---- pass 1 -------------------------------------------------------------------
    kern1 = functools.partial(_conv_stats_kernel, th=TH, wo=WO)
    bytes1 = int(xpl.size * in_isz + w_taps.size * in_isz
                 + M * C_pad * in_isz + 2 * N * n_ht * C_pad * 4)
    y, ssum, ssq = pl.pallas_call(
        kern1,
        out_shape=(jax.ShapeDtypeStruct((N, S, C_pad), compute_dtype),
                   jax.ShapeDtypeStruct((N, n_ht, 1, C_pad), jnp.float32),
                   jax.ShapeDtypeStruct((N, n_ht, 1, C_pad), jnp.float32)),
        grid=(N, n_ht),
        in_specs=[
            pl.BlockSpec((1, 8, P, Ci_pad), lambda n, t: (n, 0, 0, 0)),
            pl.BlockSpec((8, 2, Ci_pad, C_pad), lambda n, t: (0, 0, 0, 0)),
        ],
        out_specs=(
            pl.BlockSpec((1, TH * WO, C_pad), lambda n, t: (n, t, 0)),
            pl.BlockSpec((1, 1, 1, C_pad), lambda n, t: (n, t, 0, 0)),
            pl.BlockSpec((1, 1, 1, C_pad), lambda n, t: (n, t, 0, 0)),
        ),
        compiler_params=cparams,
        cost_estimate=pl.CostEstimate(flops=2 * M * 16 * Ci_pad * C_pad,
                                      transcendentals=0,
                                      bytes_accessed=bytes1),
    )(xpl, w_taps)

    # ---- tiny per-channel reduction; fold BN into one scale/shift (f32) -----------
    # TODO(synk): switch to shifted/Welford accumulation if f32 E[x^2]-E[x]^2
    #   cancellation ever matters at very large N*H*W.
    sums = jnp.sum(ssum, axis=(0, 1, 2))
    sumsq = jnp.sum(ssq, axis=(0, 1, 2))
    mean = sums / M
    var = jnp.maximum(sumsq / M - mean * mean, 0.0)
    scale = g_pad * jax.lax.rsqrt(var + EPS)            # padded channels: gamma=0 -> 0
    shift = b_pad - mean * scale
    scale = scale.reshape(1, C_pad)
    shift = shift.reshape(1, C_pad)

    # ---- pass 2 -------------------------------------------------------------------
    bytes2 = int(M * C_pad * in_isz + M * C_pad * 4 + 2 * C_pad * 4)
    out_t = pl.pallas_call(
        _bn_relu_nchw_kernel,
        out_shape=jax.ShapeDtypeStruct((N, C_pad, S), jnp.float32),
        grid=(N, n_st),
        in_specs=[
            pl.BlockSpec((1, T2, C_pad), lambda n, t: (n, t, 0)),
            pl.BlockSpec((1, C_pad), lambda n, t: (0, 0)),
            pl.BlockSpec((1, C_pad), lambda n, t: (0, 0)),
        ],
        out_specs=pl.BlockSpec((1, C_pad, T2), lambda n, t: (n, 0, t)),
        compiler_params=cparams,
        cost_estimate=pl.CostEstimate(flops=3 * M * C_pad, transcendentals=0,
                                      bytes_accessed=bytes2),
    )(y, scale, shift)

    # channel-padding slice is a no-op for real pix2pix widths (C_out % 128 == 0);
    # the output is already channels-first, so the reshape below is free.
    return out_t[:, :C_out, :].reshape(N, C_out, HO, WO)


block_forward = jax.jit(_block_forward_impl,
                        static_argnames=("compute_dtype", "block_h"))


def reference_forward(x_nchw, w_oihw, bias, gamma, beta):
    """Pure-JAX reference (same math as the PyTorch module in training mode)."""
    x_pad = jnp.pad(x_nchw, ((0, 0), (0, 0), (1, 1), (1, 1)), mode="reflect")
    y = jax.lax.conv_general_dilated(
        x_pad, w_oihw, window_strides=(2, 2), padding="VALID",
        dimension_numbers=("NCHW", "OIHW", "NCHW"),
        precision=jax.lax.Precision.HIGHEST)
    y = y + bias[None, :, None, None]
    mean = jnp.mean(y, axis=(0, 2, 3), keepdims=True)
    var = jnp.mean((y - mean) ** 2, axis=(0, 2, 3), keepdims=True)
    y = (y - mean) * jax.lax.rsqrt(var + EPS)
    y = y * gamma[None, :, None, None] + beta[None, :, None, None]
    return jnp.maximum(y, 0.0)


if __name__ == "__main__":
    # small shapes: batch=2, in_channels=4, out_channels=8, spatial=16
    N, C_in, C_out, H, W = 2, 4, 8, 16, 16
    key = jax.random.PRNGKey(0)
    kx, kw, kb = jax.random.split(key, 3)

    x = jax.random.normal(kx, (N, C_in, H, W), dtype=jnp.float32)

    # deterministic parameter init (Conv2d weight/bias; BN gamma=1, beta=0)
    fan_in = C_in * 4 * 4
    bound = 1.0 / np.sqrt(fan_in)
    w = jax.random.uniform(kw, (C_out, C_in, 4, 4), minval=-bound, maxval=bound,
                           dtype=jnp.float32)
    b = jax.random.uniform(kb, (C_out,), minval=-bound, maxval=bound,
                           dtype=jnp.float32)
    gamma = jnp.ones((C_out,), jnp.float32)
    beta = jnp.zeros((C_out,), jnp.float32)

    ref = jax.block_until_ready(reference_forward(x, w, b, gamma, beta))

    # exact path (f32 MXU inputs); block_h=2 forces a multi-tile grid (2 x 4)
    out_f32 = jax.block_until_ready(
        block_forward(x, w, b, gamma, beta, compute_dtype=jnp.float32, block_h=2))
    assert out_f32.shape == (N, C_out, H // 2, W // 2)
    np.testing.assert_allclose(np.asarray(out_f32), np.asarray(ref),
                               rtol=1e-4, atol=1e-4)

    # fast path (bf16 MXU inputs + bf16 intermediate y, f32 stats/accumulation)
    out_bf16 = jax.block_until_ready(block_forward(x, w, b, gamma, beta))
    assert out_bf16.shape == (N, C_out, H // 2, W // 2)
    np.testing.assert_allclose(np.asarray(out_bf16), np.asarray(ref),
                               rtol=5e-2, atol=5e-2)

    print("KERNEL_OK")
</pallas_src>

<mosaic_0001>
module attributes {stable_mosaic.version = 11 : i64} {
  func.func @_bn_relu_nchw_kernel(%arg0: i32, %arg1: i32, %arg2: memref<1x64x128xf32, #tpu.memory_space<vmem>>, %arg3: memref<1x128xf32, #tpu.memory_space<vmem>>, %arg4: memref<1x128xf32, #tpu.memory_space<vmem>>, %arg5: memref<1x128x64xf32, #tpu.memory_space<vmem>>) attributes {dimension_semantics = [#tpu.dimension_semantics<parallel>, #tpu.dimension_semantics<parallel>], iteration_bounds = array<i64: 2, 1>, scalar_prefetch = 0 : i64, scratch_operands = 0 : i64, tpu.core_type = #tpu.core_type<tc>, window_params = [{transform_indices = @transform_0, window_bounds = array<i64: 1, 64, 128>}, {pipeline_mode = #tpu.pipeline_mode<synchronous>, transform_indices = @transform_1, window_bounds = array<i64: 1, 128>}, {pipeline_mode = #tpu.pipeline_mode<synchronous>, transform_indices = @transform_2, window_bounds = array<i64: 1, 128>}, {transform_indices = @transform_3, window_bounds = array<i64: 1, 128, 64>}]} {
    %c0 = arith.constant 0 : index
    %c0_0 = arith.constant 0 : index
    %c0_1 = arith.constant 0 : index
    %0 = vector.load %arg2[%c0, %c0_0, %c0_1] : memref<1x64x128xf32, #tpu.memory_space<vmem>>, vector<1x64x128xf32>
    %1 = vector.shape_cast %0 : vector<1x64x128xf32> to vector<64x128xf32>
    %c0_2 = arith.constant 0 : index
    %c0_3 = arith.constant 0 : index
    %2 = vector.load %arg3[%c0_2, %c0_3] : memref<1x128xf32, #tpu.memory_space<vmem>>, vector<1x128xf32>
    %3 = vector.broadcast %2 : vector<1x128xf32> to vector<64x128xf32>
    %4 = arith.mulf %1, %3 : vector<64x128xf32>
    %c0_4 = arith.constant 0 : index
    %c0_5 = arith.constant 0 : index
    %5 = vector.load %arg4[%c0_4, %c0_5] : memref<1x128xf32, #tpu.memory_space<vmem>>, vector<1x128xf32>
    %6 = vector.broadcast %5 : vector<1x128xf32> to vector<64x128xf32>
    %7 = arith.addf %4, %6 : vector<64x128xf32>
    %cst = arith.constant 0.000000e+00 : f32
    %8 = vector.broadcast %cst : f32 to vector<64x128xf32>
    %9 = arith.maximumf %7, %8 : vector<64x128xf32>
    %10 = tpu.transpose %9, [1, 0] : vector<64x128xf32> -> vector<128x64xf32>
    %c0_6 = arith.constant 0 : index
    %c0_7 = arith.constant 0 : index
    %c0_8 = arith.constant 0 : index
    %11 = vector.load %arg5[%c0_6, %c0_7, %c0_8] : memref<1x128x64xf32, #tpu.memory_space<vmem>>, vector<1x128x64xf32>
    %12 = vector.shape_cast %11 : vector<1x128x64xf32> to vector<128x64xf32>
    %13 = vector.shape_cast %10 : vector<128x64xf32> to vector<1x128x64xf32>
    tpu.vector_store %arg5[%c0_6, %c0_7, %c0_8], %13 {strides = array<i32>} : memref<1x128x64xf32, #tpu.memory_space<vmem>>, vector<1x128x64xf32>,
    return
  }
  func.func @transform_0(%arg0: i32, %arg1: i32) -> (i32, i32, i32) {
    %c0_i32 = arith.constant 0 : i32
    %c0_i32_0 = arith.constant 0 : i32
    return %arg0, %arg1, %c0_i32 : i32, i32, i32
  }
  func.func @transform_1(%arg0: i32, %arg1: i32) -> (i32, i32) {
    %c0_i32 = arith.constant 0 : i32
    %c0_i32_0 = arith.constant 0 : i32
    %c0_i32_1 = arith.constant 0 : i32
    return %c0_i32, %c0_i32_0 : i32, i32
  }
  func.func @transform_2(%arg0: i32, %arg1: i32) -> (i32, i32) {
    %c0_i32 = arith.constant 0 : i32
    %c0_i32_0 = arith.constant 0 : i32
    %c0_i32_1 = arith.constant 0 : i32
    return %c0_i32, %c0_i32_0 : i32, i32
  }
  func.func @transform_3(%arg0: i32, %arg1: i32) -> (i32, i32, i32) {
    %c0_i32 = arith.constant 0 : i32
    %c0_i32_0 = arith.constant 0 : i32
    return %arg0, %c0_i32, %arg1 : i32, i32, i32
  }
}

module attributes {stable_mosaic.version = 11 : i64} {
  func.func @_conv_stats_kernel(%arg0: i32, %arg1: i32, %arg2: memref<1x8x72x8xf32, #tpu.memory_space<vmem>>, %arg3: memref<8x2x8x128xf32, #tpu.memory_space<vmem>>, %arg4: memref<1x16x128xf32, #tpu.memory_space<vmem>>, %arg5: memref<1x1x1x128xf32, #tpu.memory_space<vmem>>, %arg6: memref<1x1x1x128xf32, #tpu.memory_space<vmem>>) attributes {dimension_semantics = [#tpu.dimension_semantics<parallel>, #tpu.dimension_semantics<parallel>], iteration_bounds = array<i64: 2, 4>, scalar_prefetch = 0 : i64, scratch_operands = 0 : i64, tpu.core_type = #tpu.core_type<tc>, window_params = [{transform_indices = @transform_0, window_bounds = array<i64: 1, 8, 72, 8>}, {pipeline_mode = #tpu.pipeline_mode<synchronous>, transform_indices = @transform_1, window_bounds = array<i64: 8, 2, 8, 128>}, {transform_indices = @transform_2, window_bounds = array<i64: 1, 16, 128>}, {transform_indices = @transform_3, window_bounds = array<i64: 1, 1, 1, 128>}, {transform_indices = @transform_4, window_bounds = array<i64: 1, 1, 1, 128>}]} {
    %c16_i32 = arith.constant 16 : i32
    %0 = arith.muli %arg1, %c16_i32 : i32
    %c0_i32 = arith.constant 0 : i32
    %1 = arith.addi %0, %c0_i32 : i32
    %2 = tpu.assume_multiple %1, 8 : i32
    %c0 = arith.constant 0 : index
    %c0_0 = arith.constant 0 : index
    %3 = arith.index_cast %2 : i32 to index
    %c0_1 = arith.constant 0 : index
    %4 = vector.load %arg2[%c0, %c0_0, %3, %c0_1] : memref<1x8x72x8xf32, #tpu.memory_space<vmem>>, vector<1x1x16x8xf32>
    %5 = vector.shape_cast %4 : vector<1x1x16x8xf32> to vector<16x8xf32>
    %c0_2 = arith.constant 0 : index
    %c0_3 = arith.constant 0 : index
    %c0_4 = arith.constant 0 : index
    %c0_5 = arith.constant 0 : index
    %6 = vector.load %arg3[%c0_2, %c0_3, %c0_4, %c0_5] : memref<8x2x8x128xf32, #tpu.memory_space<vmem>>, vector<1x1x8x128xf32>
    %7 = vector.shape_cast %6 : vector<1x1x8x128xf32> to vector<8x128xf32>
    %cst = arith.constant dense<0.000000e+00> : vector<16x128xf32>
    %8 = tpu.matmul %5, %7, %cst {dimension_numbers = #tpu.dot_dimension_numbers<[1], [0], [0], [1], [0, 0, 1, 1], [], []>, precision = #tpu.contract_precision<fp32>} : vector<16x8xf32>, vector<8x128xf32>, vector<16x128xf32> -> vector<16x128xf32>
    %c8_i32 = arith.constant 8 : i32
    %9 = arith.addi %0, %c8_i32 : i32
    %10 = tpu.assume_multiple %9, 8 : i32
    %c0_6 = arith.constant 0 : index
    %c0_7 = arith.constant 0 : index
    %11 = arith.index_cast %10 : i32 to index
    %c0_8 = arith.constant 0 : index
    %12 = vector.load %arg2[%c0_6, %c0_7, %11, %c0_8] : memref<1x8x72x8xf32, #tpu.memory_space<vmem>>, vector<1x1x16x8xf32>
    %13 = vector.shape_cast %12 : vector<1x1x16x8xf32> to vector<16x8xf32>
    %c0_9 = arith.constant 0 : index
    %c1 = arith.constant 1 : index
    %c0_10 = arith.constant 0 : index
    %c0_11 = arith.constant 0 : index
    %14 = vector.load %arg3[%c0_9, %c1, %c0_10, %c0_11] : memref<8x2x8x128xf32, #tpu.memory_space<vmem>>, vector<1x1x8x128xf32>
    %15 = vector.shape_cast %14 : vector<1x1x8x128xf32> to vector<8x128xf32>
    %cst_12 = arith.constant dense<0.000000e+00> : vector<16x128xf32>
    %16 = tpu.matmul %13, %15, %cst_12 {dimension_numbers = #tpu.dot_dimension_numbers<[1], [0], [0], [1], [0, 0, 1, 1], [], []>, precision = #tpu.contract_precision<fp32>} : vector<16x8xf32>, vector<8x128xf32>, vector<16x128xf32> -> vector<16x128xf32>
    %17 = arith.addf %8, %16 : vector<16x128xf32>
    %c0_i32_13 = arith.constant 0 : i32
    %18 = arith.addi %0, %c0_i32_13 : i32
    %19 = tpu.assume_multiple %18, 8 : i32
    %c0_14 = arith.constant 0 : index
    %c1_15 = arith.constant 1 : index
    %20 = arith.index_cast %19 : i32 to index
    %c0_16 = arith.constant 0 : index
    %21 = vector.load %arg2[%c0_14, %c1_15, %20, %c0_16] : memref<1x8x72x8xf32, #tpu.memory_space<vmem>>, vector<1x1x16x8xf32>
    %22 = vector.shape_cast %21 : vector<1x1x16x8xf32> to vector<16x8xf32>
    %c1_17 = arith.constant 1 : index
    %c0_18 = arith.constant 0 : index
    %c0_19 = arith.constant 0 : index
    %c0_20 = arith.constant 0 : index
    %23 = vector.load %arg3[%c1_17, %c0_18, %c0_19, %c0_20] : memref<8x2x8x128xf32, #tpu.memory_space<vmem>>, vector<1x1x8x128xf32>
    %24 = vector.shape_cast %23 : vector<1x1x8x128xf32> to vector<8x128xf32>
    %cst_21 = arith.constant dense<0.000000e+00> : vector<16x128xf32>
    %25 = tpu.matmul %22, %24, %cst_21 {dimension_numbers = #tpu.dot_dimension_numbers<[1], [0], [0], [1], [0, 0, 1, 1], [], []>, precision = #tpu.contract_precision<fp32>} : vector<16x8xf32>, vector<8x128xf32>, vector<16x128xf32> -> vector<16x128xf32>
    %26 = arith.addf %17, %25 : vector<16x128xf32>
    %c8_i32_22 = arith.constant 8 : i32
    %27 = arith.addi %0, %c8_i32_22 : i32
    %28 = tpu.assume_multiple %27, 8 : i32
    %c0_23 = arith.constant 0 : index
    %c1_24 = arith.constant 1 : index
    %29 = arith.index_cast %28 : i32 to index
    %c0_25 = arith.constant 0 : index
    %30 = vector.load %arg2[%c0_23, %c1_24, %29, %c0_25] : memref<1x8x72x8xf32, #tpu.memory_space<vmem>>, vector<1x1x16x8xf32>
    %31 = vector.shape_cast %30 : vector<1x1x16x8xf32> to vector<16x8xf32>
    %c1_26 = arith.constant 1 : index
    %c1_27 = arith.constant 1 : index
    %c0_28 = arith.constant 0 : index
    %c0_29 = arith.constant 0 : index
    %32 = vector.load %arg3[%c1_26, %c1_27, %c0_28, %c0_29] : memref<8x2x8x128xf32, #tpu.memory_space<vmem>>, vector<1x1x8x128xf32>
    %33 = vector.shape_cast %32 : vector<1x1x8x128xf32> to vector<8x128xf32>
    %cst_30 = arith.constant dense<0.000000e+00> : vector<16x128xf32>
    %34 = tpu.matmul %31, %33, %cst_30 {dimension_numbers = #tpu.dot_dimension_numbers<[1], [0], [0], [1], [0, 0, 1, 1], [], []>, precision = #tpu.contract_precision<fp32>} : vector<16x8xf32>, vector<8x128xf32>, vector<16x128xf32> -> vector<16x128xf32>
    %35 = arith.addf %26, %34 : vector<16x128xf32>
    %c0_i32_31 = arith.constant 0 : i32
    %36 = arith.addi %0, %c0_i32_31 : i32
    %37 = tpu.assume_multiple %36, 8 : i32
    %c0_32 = arith.constant 0 : index
    %c2 = arith.constant 2 : index
    %38 = arith.index_cast %37 : i32 to index
    %c0_33 = arith.constant 0 : index
    %39 = vector.load %arg2[%c0_32, %c2, %38, %c0_33] : memref<1x8x72x8xf32, #tpu.memory_space<vmem>>, vector<1x1x16x8xf32>
    %40 = vector.shape_cast %39 : vector<1x1x16x8xf32> to vector<16x8xf32>
    %c2_34 = arith.constant 2 : index
    %c0_35 = arith.constant 0 : index
    %c0_36 = arith.constant 0 : index
    %c0_37 = arith.constant 0 : index
    %41 = vector.load %arg3[%c2_34, %c0_35, %c0_36, %c0_37] : memref<8x2x8x128xf32, #tpu.memory_space<vmem>>, vector<1x1x8x128xf32>
    %42 = vector.shape_cast %41 : vector<1x1x8x128xf32> to vector<8x128xf32>
    %cst_38 = arith.constant dense<0.000000e+00> : vector<16x128xf32>
    %43 = tpu.matmul %40, %42, %cst_38 {dimension_numbers = #tpu.dot_dimension_numbers<[1], [0], [0], [1], [0, 0, 1, 1], [], []>, precision = #tpu.contract_precision<fp32>} : vector<16x8xf32>, vector<8x128xf32>, vector<16x128xf32> -> vector<16x128xf32>
    %44 = arith.addf %35, %43 : vector<16x128xf32>
    %c8_i32_39 = arith.constant 8 : i32
    %45 = arith.addi %0, %c8_i32_39 : i32
    %46 = tpu.assume_multiple %45, 8 : i32
    %c0_40 = arith.constant 0 : index
    %c2_41 = arith.constant 2 : index
    %47 = arith.index_cast %46 : i32 to index
    %c0_42 = arith.constant 0 : index
    %48 = vector.load %arg2[%c0_40, %c2_41, %47, %c0_42] : memref<1x8x72x8xf32, #tpu.memory_space<vmem>>, vector<1x1x16x8xf32>
    %49 = vector.shape_cast %48 : vector<1x1x16x8xf32> to vector<16x8xf32>
    %c2_43 = arith.constant 2 : index
    %c1_44 = arith.constant 1 : index
    %c0_45 = arith.constant 0 : index
    %c0_46 = arith.constant 0 : index
    %50 = vector.load %arg3[%c2_43, %c1_44, %c0_45, %c0_46] : memref<8x2x8x128xf32, #tpu.memory_space<vmem>>, vector<1x1x8x128xf32>
    %51 = vector.shape_cast %50 : vector<1x1x8x128xf32> to vector<8x128xf32>
    %cst_47 = arith.constant dense<0.000000e+00> : vector<16x128xf32>
    %52 = tpu.matmul %49, %51, %cst_47 {dimension_numbers = #tpu.dot_dimension_numbers<[1], [0], [0], [1], [0, 0, 1, 1], [], []>, precision = #tpu.contract_precision<fp32>} : vector<16x8xf32>, vector<8x128xf32>, vector<16x128xf32> -> vector<16x128xf32>
    %53 = arith.addf %44, %52 : vector<16x128xf32>
    %c0_i32_48 = arith.constant 0 : i32
    %54 = arith.addi %0, %c0_i32_48 : i32
    %55 = tpu.assume_multiple %54, 8 : i32
    %c0_49 = arith.constant 0 : index
    %c3 = arith.constant 3 : index
    %56 = arith.index_cast %55 : i32 to index
    %c0_50 = arith.constant 0 : index
    %57 = vector.load %arg2[%c0_49, %c3, %56, %c0_50] : memref<1x8x72x8xf32, #tpu.memory_space<vmem>>, vector<1x1x16x8xf32>
    %58 = vector.shape_cast %57 : vector<1x1x16x8xf32> to vector<16x8xf32>
    %c3_51 = arith.constant 3 : index
    %c0_52 = arith.constant 0 : index
    %c0_53 = arith.constant 0 : index
    %c0_54 = arith.constant 0 : index
    %59 = vector.load %arg3[%c3_51, %c0_52, %c0_53, %c0_54] : memref<8x2x8x128xf32, #tpu.memory_space<vmem>>, vector<1x1x8x128xf32>
    %60 = vector.shape_cast %59 : vector<1x1x8x128xf32> to vector<8x128xf32>
    %cst_55 = arith.constant dense<0.000000e+00> : vector<16x128xf32>
    %61 = tpu.matmul %58, %60, %cst_55 {dimension_numbers = #tpu.dot_dimension_numbers<[1], [0], [0], [1], [0, 0, 1, 1], [], []>, precision = #tpu.contract_precision<fp32>} : vector<16x8xf32>, vector<8x128xf32>, vector<16x128xf32> -> vector<16x128xf32>
    %62 = arith.addf %53, %61 : vector<16x128xf32>
    %c8_i32_56 = arith.constant 8 : i32
    %63 = arith.addi %0, %c8_i32_56 : i32
    %64 = tpu.assume_multiple %63, 8 : i32
    %c0_57 = arith.constant 0 : index
    %c3_58 = arith.constant 3 : index
    %65 = arith.index_cast %64 : i32 to index
    %c0_59 = arith.constant 0 : index
    %66 = vector.load %arg2[%c0_57, %c3_58, %65, %c0_59] : memref<1x8x72x8xf32, #tpu.memory_space<vmem>>, vector<1x1x16x8xf32>
    %67 = vector.shape_cast %66 : vector<1x1x16x8xf32> to vector<16x8xf32>
    %c3_60 = arith.constant 3 : index
    %c1_61 = arith.constant 1 : index
    %c0_62 = arith.constant 0 : index
    %c0_63 = arith.constant 0 : index
    %68 = vector.load %arg3[%c3_60, %c1_61, %c0_62, %c0_63] : memref<8x2x8x128xf32, #tpu.memory_space<vmem>>, vector<1x1x8x128xf32>
    %69 = vector.shape_cast %68 : vector<1x1x8x128xf32> to vector<8x128xf32>
    %cst_64 = arith.constant dense<0.000000e+00> : vector<16x128xf32>
    %70 = tpu.matmul %67, %69, %cst_64 {dimension_numbers = #tpu.dot_dimension_numbers<[1], [0], [0], [1], [0, 0, 1, 1], [], []>, precision = #tpu.contract_precision<fp32>} : vector<16x8xf32>, vector<8x128xf32>, vector<16x128xf32> -> vector<16x128xf32>
    %71 = arith.addf %62, %70 : vector<16x128xf32>
    %c0_i32_65 = arith.constant 0 : i32
    %72 = arith.addi %0, %c0_i32_65 : i32
    %73 = tpu.assume_multiple %72, 8 : i32
    %c0_66 = arith.constant 0 : index
    %c4 = arith.constant 4 : index
    %74 = arith.index_cast %73 : i32 to index
    %c0_67 = arith.constant 0 : index
    %75 = vector.load %arg2[%c0_66, %c4, %74, %c0_67] : memref<1x8x72x8xf32, #tpu.memory_space<vmem>>, vector<1x1x16x8xf32>
    %76 = vector.shape_cast %75 : vector<1x1x16x8xf32> to vector<16x8xf32>
    %c4_68 = arith.constant 4 : index
    %c0_69 = arith.constant 0 : index
    %c0_70 = arith.constant 0 : index
    %c0_71 = arith.constant 0 : index
    %77 = vector.load %arg3[%c4_68, %c0_69, %c0_70, %c0_71] : memref<8x2x8x128xf32, #tpu.memory_space<vmem>>, vector<1x1x8x128xf32>
    %78 = vector.shape_cast %77 : vector<1x1x8x128xf32> to vector<8x128xf32>
    %cst_72 = arith.constant dense<0.000000e+00> : vector<16x128xf32>
    %79 = tpu.matmul %76, %78, %cst_72 {dimension_numbers = #tpu.dot_dimension_numbers<[1], [0], [0], [1], [0, 0, 1, 1], [], []>, precision = #tpu.contract_precision<fp32>} : vector<16x8xf32>, vector<8x128xf32>, vector<16x128xf32> -> vector<16x128xf32>
    %80 = arith.addf %71, %79 : vector<16x128xf32>
    %c8_i32_73 = arith.constant 8 : i32
    %81 = arith.addi %0, %c8_i32_73 : i32
    %82 = tpu.assume_multiple %81, 8 : i32
    %c0_74 = arith.constant 0 : index
    %c4_75 = arith.constant 4 : index
    %83 = arith.index_cast %82 : i32 to index
    %c0_76 = arith.constant 0 : index
    %84 = vector.load %arg2[%c0_74, %c4_75, %83, %c0_76] : memref<1x8x72x8xf32, #tpu.memory_space<vmem>>, vector<1x1x16x8xf32>
    %85 = vector.shape_cast %84 : vector<1x1x16x8xf32> to vector<16x8xf32>
    %c4_77 = arith.constant 4 : index
    %c1_78 = arith.constant 1 : index
    %c0_79 = arith.constant 0 : index
    %c0_80 = arith.constant 0 : index
    %86 = vector.load %arg3[%c4_77, %c1_78, %c0_79, %c0_80] : memref<8x2x8x128xf32, #tpu.memory_space<vmem>>, vector<1x1x8x128xf32>
    %87 = vector.shape_cast %86 : vector<1x1x8x128xf32> to vector<8x128xf32>
    %cst_81 = arith.constant dense<0.000000e+00> : vector<16x128xf32>
    %88 = tpu.matmul %85, %87, %cst_81 {dimension_numbers = #tpu.dot_dimension_numbers<[1], [0], [0], [1], [0, 0, 1, 1], [], []>, precision = #tpu.contract_precision<fp32>} : vector<16x8xf32>, vector<8x128xf32>, vector<16x128xf32> -> vector<16x128xf32>
    %89 = arith.addf %80, %88 : vector<16x128xf32>
    %c0_i32_82 = arith.constant 0 : i32
    %90 = arith.addi %0, %c0_i32_82 : i32
    %91 = tpu.assume_multiple %90, 8 : i32
    %c0_83 = arith.constant 0 : index
    %c5 = arith.constant 5 : index
    %92 = arith.index_cast %91 : i32 to index
    %c0_84 = arith.constant 0 : index
    %93 = vector.load %arg2[%c0_83, %c5, %92, %c0_84] : memref<1x8x72x8xf32, #tpu.memory_space<vmem>>, vector<1x1x16x8xf32>
    %94 = vector.shape_cast %93 : vector<1x1x16x8xf32> to vector<16x8xf32>
    %c5_85 = arith.constant 5 : index
    %c0_86 = arith.constant 0 : index
    %c0_87 = arith.constant 0 : index
    %c0_88 = arith.constant 0 : index
    %95 = vector.load %arg3[%c5_85, %c0_86, %c0_87, %c0_88] : memref<8x2x8x128xf32, #tpu.memory_space<vmem>>, vector<1x1x8x128xf32>
    %96 = vector.shape_cast %95 : vector<1x1x8x128xf32> to vector<8x128xf32>
    %cst_89 = arith.constant dense<0.000000e+00> : vector<16x128xf32>
    %97 = tpu.matmul %94, %96, %cst_89 {dimension_numbers = #tpu.dot_dimension_numbers<[1], [0], [0], [1], [0, 0, 1, 1], [], []>, precision = #tpu.contract_precision<fp32>} : vector<16x8xf32>, vector<8x128xf32>, vector<16x128xf32> -> vector<16x128xf32>
    %98 = arith.addf %89, %97 : vector<16x128xf32>
    %c8_i32_90 = arith.constant 8 : i32
    %99 = arith.addi %0, %c8_i32_90 : i32
    %100 = tpu.assume_multiple %99, 8 : i32
    %c0_91 = arith.constant 0 : index
    %c5_92 = arith.constant 5 : index
    %101 = arith.index_cast %100 : i32 to index
    %c0_93 = arith.constant 0 : index
    %102 = vector.load %arg2[%c0_91, %c5_92, %101, %c0_93] : memref<1x8x72x8xf32, #tpu.memory_space<vmem>>, vector<1x1x16x8xf32>
    %103 = vector.shape_cast %102 : vector<1x1x16x8xf32> to vector<16x8xf32>
    %c5_94 = arith.constant 5 : index
    %c1_95 = arith.constant 1 : index
    %c0_96 = arith.constant 0 : index
    %c0_97 = arith.constant 0 : index
    %104 = vector.load %arg3[%c5_94, %c1_95, %c0_96, %c0_97] : memref<8x2x8x128xf32, #tpu.memory_space<vmem>>, vector<1x1x8x128xf32>
    %105 = vector.shape_cast %104 : vector<1x1x8x128xf32> to vector<8x128xf32>
    %cst_98 = arith.constant dense<0.000000e+00> : vector<16x128xf32>
    %106 = tpu.matmul %103, %105, %cst_98 {dimension_numbers = #tpu.dot_dimension_numbers<[1], [0], [0], [1], [0, 0, 1, 1], [], []>, precision = #tpu.contract_precision<fp32>} : vector<16x8xf32>, vector<8x128xf32>, vector<16x128xf32> -> vector<16x128xf32>
    %107 = arith.addf %98, %106 : vector<16x128xf32>
    %c0_i32_99 = arith.constant 0 : i32
    %108 = arith.addi %0, %c0_i32_99 : i32
    %109 = tpu.assume_multiple %108, 8 : i32
    %c0_100 = arith.constant 0 : index
    %c6 = arith.constant 6 : index
    %110 = arith.index_cast %109 : i32 to index
    %c0_101 = arith.constant 0 : index
    %111 = vector.load %arg2[%c0_100, %c6, %110, %c0_101] : memref<1x8x72x8xf32, #tpu.memory_space<vmem>>, vector<1x1x16x8xf32>
    %112 = vector.shape_cast %111 : vector<1x1x16x8xf32> to vector<16x8xf32>
    %c6_102 = arith.constant 6 : index
    %c0_103 = arith.constant 0 : index
    %c0_104 = arith.constant 0 : index
    %c0_105 = arith.constant 0 : index
    %113 = vector.load %arg3[%c6_102, %c0_103, %c0_104, %c0_105] : memref<8x2x8x128xf32, #tpu.memory_space<vmem>>, vector<1x1x8x128xf32>
    %114 = vector.shape_cast %113 : vector<1x1x8x128xf32> to vector<8x128xf32>
    %cst_106 = arith.constant dense<0.000000e+00> : vector<16x128xf32>
    %115 = tpu.matmul %112, %114, %cst_106 {dimension_numbers = #tpu.dot_dimension_numbers<[1], [0], [0], [1], [0, 0, 1, 1], [], []>, precision = #tpu.contract_precision<fp32>} : vector<16x8xf32>, vector<8x128xf32>, vector<16x128xf32> -> vector<16x128xf32>
    %116 = arith.addf %107, %115 : vector<16x128xf32>
    %c8_i32_107 = arith.constant 8 : i32
    %117 = arith.addi %0, %c8_i32_107 : i32
    %118 = tpu.assume_multiple %117, 8 : i32
    %c0_108 = arith.constant 0 : index
    %c6_109 = arith.constant 6 : index
    %119 = arith.index_cast %118 : i32 to index
    %c0_110 = arith.constant 0 : index
    %120 = vector.load %arg2[%c0_108, %c6_109, %119, %c0_110] : memref<1x8x72x8xf32, #tpu.memory_space<vmem>>, vector<1x1x16x8xf32>
    %121 = vector.shape_cast %120 : vector<1x1x16x8xf32> to vector<16x8xf32>
    %c6_111 = arith.constant 6 : index
    %c1_112 = arith.constant 1 : index
    %c0_113 = arith.constant 0 : index
    %c0_114 = arith.constant 0 : index
    %122 = vector.load %arg3[%c6_111, %c1_112, %c0_113, %c0_114] : memref<8x2x8x128xf32, #tpu.memory_space<vmem>>, vector<1x1x8x128xf32>
    %123 = vector.shape_cast %122 : vector<1x1x8x128xf32> to vector<8x128xf32>
    %cst_115 = arith.constant dense<0.000000e+00> : vector<16x128xf32>
    %124 = tpu.matmul %121, %123, %cst_115 {dimension_numbers = #tpu.dot_dimension_numbers<[1], [0], [0], [1], [0, 0, 1, 1], [], []>, precision = #tpu.contract_precision<fp32>} : vector<16x8xf32>, vector<8x128xf32>, vector<16x128xf32> -> vector<16x128xf32>
    %125 = arith.addf %116, %124 : vector<16x128xf32>
    %c0_i32_116 = arith.constant 0 : i32
    %126 = arith.addi %0, %c0_i32_116 : i32
    %127 = tpu.assume_multiple %126, 8 : i32
    %c0_117 = arith.constant 0 : index
    %c7 = arith.constant 7 : index
    %128 = arith.index_cast %127 : i32 to index
    %c0_118 = arith.constant 0 : index
    %129 = vector.load %arg2[%c0_117, %c7, %128, %c0_118] : memref<1x8x72x8xf32, #tpu.memory_space<vmem>>, vector<1x1x16x8xf32>
    %130 = vector.shape_cast %129 : vector<1x1x16x8xf32> to vector<16x8xf32>
    %c7_119 = arith.constant 7 : index
    %c0_120 = arith.constant 0 : index
    %c0_121 = arith.constant 0 : index
    %c0_122 = arith.constant 0 : index
    %131 = vector.load %arg3[%c7_119, %c0_120, %c0_121, %c0_122] : memref<8x2x8x128xf32, #tpu.memory_space<vmem>>, vector<1x1x8x128xf32>
    %132 = vector.shape_cast %131 : vector<1x1x8x128xf32> to vector<8x128xf32>
    %cst_123 = arith.constant dense<0.000000e+00> : vector<16x128xf32>
    %133 = tpu.matmul %130, %132, %cst_123 {dimension_numbers = #tpu.dot_dimension_numbers<[1], [0], [0], [1], [0, 0, 1, 1], [], []>, precision = #tpu.contract_precision<fp32>} : vector<16x8xf32>, vector<8x128xf32>, vector<16x128xf32> -> vector<16x128xf32>
    %134 = arith.addf %125, %133 : vector<16x128xf32>
    %c8_i32_124 = arith.constant 8 : i32
    %135 = arith.addi %0, %c8_i32_124 : i32
    %136 = tpu.assume_multiple %135, 8 : i32
    %c0_125 = arith.constant 0 : index
    %c7_126 = arith.constant 7 : index
    %137 = arith.index_cast %136 : i32 to index
    %c0_127 = arith.constant 0 : index
    %138 = vector.load %arg2[%c0_125, %c7_126, %137, %c0_127] : memref<1x8x72x8xf32, #tpu.memory_space<vmem>>, vector<1x1x16x8xf32>
    %139 = vector.shape_cast %138 : vector<1x1x16x8xf32> to vector<16x8xf32>
    %c7_128 = arith.constant 7 : index
    %c1_129 = arith.constant 1 : index
    %c0_130 = arith.constant 0 : index
    %c0_131 = arith.constant 0 : index
    %140 = vector.load %arg3[%c7_128, %c1_129, %c0_130, %c0_131] : memref<8x2x8x128xf32, #tpu.memory_space<vmem>>, vector<1x1x8x128xf32>
    %141 = vector.shape_cast %140 : vector<1x1x8x128xf32> to vector<8x128xf32>
    %cst_132 = arith.constant dense<0.000000e+00> : vector<16x128xf32>
    %142 = tpu.matmul %139, %141, %cst_132 {dimension_numbers = #tpu.dot_dimension_numbers<[1], [0], [0], [1], [0, 0, 1, 1], [], []>, precision = #tpu.contract_precision<fp32>} : vector<16x8xf32>, vector<8x128xf32>, vector<16x128xf32> -> vector<16x128xf32>
    %143 = arith.addf %134, %142 : vector<16x128xf32>
    %c0_133 = arith.constant 0 : index
    %c0_134 = arith.constant 0 : index
    %c0_135 = arith.constant 0 : index
    %144 = vector.load %arg4[%c0_133, %c0_134, %c0_135] : memref<1x16x128xf32, #tpu.memory_space<vmem>>, vector<1x16x128xf32>
    %145 = vector.shape_cast %144 : vector<1x16x128xf32> to vector<16x128xf32>
    %146 = vector.shape_cast %143 : vector<16x128xf32> to vector<1x16x128xf32>
    tpu.vector_store %arg4[%c0_133, %c0_134, %c0_135], %146 {strides = array<i32>} : memref<1x16x128xf32, #tpu.memory_space<vmem>>, vector<1x16x128xf32>,
    %cst_136 = arith.constant dense<0.000000e+00> : vector<128xf32>
    %147 = vector.multi_reduction <add>, %143, %cst_136 [0] : vector<16x128xf32> to vector<128xf32>
    %148 = vector.shape_cast %147 : vector<128xf32> to vector<1x128xf32>
    %c0_137 = arith.constant 0 : index
    %c0_138 = arith.constant 0 : index
    %c0_139 = arith.constant 0 : index
    %c0_140 = arith.constant 0 : index
    %149 = vector.load %arg5[%c0_137, %c0_138, %c0_139, %c0_140] : memref<1x1x1x128xf32, #tpu.memory_space<vmem>>, vector<1x1x1x128xf32>
    %150 = vector.shape_cast %149 : vector<1x1x1x128xf32> to vector<1x128xf32>
    %151 = vector.shape_cast %148 : vector<1x128xf32> to vector<1x1x1x128xf32>
    tpu.vector_store %arg5[%c0_137, %c0_138, %c0_139, %c0_140], %151 {strides = array<i32>} : memref<1x1x1x128xf32, #tpu.memory_space<vmem>>, vector<1x1x1x128xf32>,
    %152 = arith.mulf %143, %143 : vector<16x128xf32>
    %cst_141 = arith.constant dense<0.000000e+00> : vector<128xf32>
    %153 = vector.multi_reduction <add>, %152, %cst_141 [0] : vector<16x128xf32> to vector<128xf32>
    %154 = vector.shape_cast %153 : vector<128xf32> to vector<1x128xf32>
    %c0_142 = arith.constant 0 : index
    %c0_143 = arith.constant 0 : index
    %c0_144 = arith.constant 0 : index
    %c0_145 = arith.constant 0 : index
    %155 = vector.load %arg6[%c0_142, %c0_143, %c0_144, %c0_145] : memref<1x1x1x128xf32, #tpu.memory_space<vmem>>, vector<1x1x1x128xf32>
    %156 = vector.shape_cast %155 : vector<1x1x1x128xf32> to vector<1x128xf32>
    %157 = vector.shape_cast %154 : vector<1x128xf32> to vector<1x1x1x128xf32>
    tpu.vector_store %arg6[%c0_142, %c0_143, %c0_144, %c0_145], %157 {strides = array<i32>} : memref<1x1x1x128xf32, #tpu.memory_space<vmem>>, vector<1x1x1x128xf32>,
    return
  }
  func.func @transform_0(%arg0: i32, %arg1: i32) -> (i32, i32, i32, i32) {
    %c0_i32 = arith.constant 0 : i32
    %c0_i32_0 = arith.constant 0 : i32
    %c0_i32_1 = arith.constant 0 : i32
    %c0_i32_2 = arith.constant 0 : i32
    return %arg0, %c0_i32, %c0_i32_0, %c0_i32_1 : i32, i32, i32, i32
  }
  func.func @transform_1(%arg0: i32, %arg1: i32) -> (i32, i32, i32, i32) {
    %c0_i32 = arith.constant 0 : i32
    %c0_i32_0 = arith.constant 0 : i32
    %c0_i32_1 = arith.constant 0 : i32
    %c0_i32_2 = arith.constant 0 : i32
    %c0_i32_3 = arith.constant 0 : i32
    return %c0_i32, %c0_i32_0, %c0_i32_1, %c0_i32_2 : i32, i32, i32, i32
  }
  func.func @transform_2(%arg0: i32, %arg1: i32) -> (i32, i32, i32) {
    %c0_i32 = arith.constant 0 : i32
    %c0_i32_0 = arith.constant 0 : i32
    return %arg0, %arg1, %c0_i32 : i32, i32, i32
  }
  func.func @transform_3(%arg0: i32, %arg1: i32) -> (i32, i32, i32, i32) {
    %c0_i32 = arith.constant 0 : i32
    %c0_i32_0 = arith.constant 0 : i32
    %c0_i32_1 = arith.constant 0 : i32
    return %arg0, %arg1, %c0_i32, %c0_i32_0 : i32, i32, i32, i32
  }
  func.func @transform_4(%arg0: i32, %arg1: i32) -> (i32, i32, i32, i32) {
    %c0_i32 = arith.constant 0 : i32
    %c0_i32_0 = arith.constant 0 : i32
    %c0_i32_1 = arith.constant 0 : i32
    return %arg0, %arg1, %c0_i32, %c0_i32_0 : i32, i32, i32, i32
  }
}

</mosaic_0001>

<bundles_post_ra>
// kernel: _block_forward_impl.3
= control target key start
LH: loop header
LB: loop body
LE: loop exit
PB: predicated region body
PF: predicated region fallthrough
CT: control target
= control target key end

     0   :  { %s469_s12 = smov 0   ;;  %s471_s13 = smov 0   ;;  %s556_s0 = inlined_call_operand.vmem [shape: f32[2,64,128], index: 0, kind: input, shape index: {}]   ;;  %s557_s1 = inlined_call_operand.vmem [shape: f32[1,128], index: 1, kind: input, shape index: {}]   ;;  %s558_s2 = inlined_call_operand.vmem [shape: f32[1,128], index: 2, kind: input, shape index: {}]   ;;  %s559_s3 = inlined_call_operand.vmem [shape: f32[2,128,64], index: 3, kind: output, shape index: {}]  }
   0x1   :  { %s473_s14 = smov 0  }
   0x2 LB: > { %s25_s15 = sadd.s32 1, %s443_s13  ;;  %p389_p0 = scmp.ge.s32.totalorder %s447_s14, 1  ;;  %s447_s14 = sphi %s473_s14, %s13_s14   ;;  %s443_s13 = sphi %s471_s13, %s561_s13   ;;  %s439_s12 = sphi %s469_s12, %s560_s12  }
   0x3   : > { %p27_p1 = scmp.ge.s32.totalorder %s25_s15, 2  ;;  %p158_p2 = scmp.lt.s32.totalorder %s447_s14, 3 }
   0x5   : > { %s563_s15 = smov (%p27_p1, %s25_s15), 0  ;;  %p159_p3 = pnand %p389_p0, %p158_p2 }
   0x6   : > { %p190_p4 = scmp.lt.s32.totalorder (!%p159_p3), %s439_s12, 1  ;;  %v394_v0 = vld [vmem:[%s557_s1] ss:$0 sm:$0xff] (!%p159_p3)  ;;  %vm285_vm0 = vcmask (!%p159_p3), 523264  }
   0x7   : > { %162 = sbr.rel (%p159_p3) target bundleno = 214 (0xd6), region = 32  ;;  %v395_v1 = vld [vmem:[%s558_s2] ss:$0 sm:$0xff] (!%p159_p3) }
   0xe   : > { %s565_s12 = smov (!%p190_p4, %s439_s12), 1 }
   0xf   : > { %s398_s16 = sshll.u32 %s565_s12, 6  ;;  %s399_s24 = sshll.u32 %s565_s12, 7 }
  0x10   : > { %s496_s21 = scalar_lea.vmem %s556_s0, %s398_s16  ;;  %s513_s27 = scalar_lea.vmem %s559_s3, %s399_s24 }
  0x11   : > { %v207_v2 = vld [vmem:[%s496_s21] sm:$0xff]  ;;  %v208_v3 = vld [vmem:[%s496_s21 + $0x8] sm:$0xff]  ;;  %v209_v4 = vld [vmem:[%s496_s21 + $0x10] sm:$0xff] }
  0x12   : > { %v222_v5 = vmul.f32 %v394_v0, %v207_v2  ;;  %v223_v6 = vmul.f32 %v394_v0, %v208_v3  ;;  %v224_v9 = vmul.f32 %v394_v0, %v209_v4  ;;  %v210_v10 = vld [vmem:[%s496_s21 + $0x18] sm:$0xff]  ;;  %v211_v15 = vld [vmem:[%s496_s21 + $0x20] sm:$0xff]  ;;  %v212_v19 = vld [vmem:[%s496_s21 + $0x28] sm:$0xff] }
  0x13   : > { %v225_v14 = vmul.f32 %v394_v0, %v210_v10  ;;  %v226_v18 = vmul.f32 %v394_v0, %v211_v15  ;;  %v227_v22 = vmul.f32 %v394_v0, %v212_v19  ;;  %v213_v23 = vld [vmem:[%s496_s21 + $0x30] sm:$0xff]  ;;  %v214_v27 = vld [vmem:[%s496_s21 + $0x38] sm:$0xff] }
  0x14   : > { %v237_v7 = vadd.f32 %v395_v1, %v222_v5  ;;  %v238_v8 = vadd.f32 %v395_v1, %v223_v6  ;;  %v239_v13 = vadd.f32 %v395_v1, %v224_v9  ;;  %v228_v26 = vmul.f32 %v394_v0, %v213_v23 }
  0x15   : > { %v240_v17 = vadd.f32 %v395_v1, %v225_v14  ;;  %v241_v21 = vadd.f32 %v395_v1, %v226_v18  ;;  %v242_v25 = vadd.f32 %v395_v1, %v227_v22  ;;  %v229_v30 = vmul.f32 %v394_v0, %v214_v27 }
  0x16   : > { %v245_v11 = vmax.f32 %v237_v7, 0.0  ;;  %v246_v12 = vmax.f32 %v238_v8, 0.0  ;;  %v247_v16 = vmax.f32 %v239_v13, 0.0  ;;  %v243_v29 = vadd.f32 %v395_v1, %v228_v26 }
  0x17   : > { %v248_v20 = vmax.f32 %v240_v17, 0.0  ;;  %v249_v24 = vmax.f32 %v241_v21, 0.0  ;;  %v250_v28 = vmax.f32 %v242_v25, 0.0  ;;  %v244_v32 = vadd.f32 %v395_v1, %v229_v30 }
  0x18   : > { %253 = vxpose.xlu0.b32.start [1/8] (short) %v245_v11, 128  ;;  %v251_v31 = vmax.f32 %v243_v29, 0.0 }
  0x19   : > { %v252_v33 = vmax.f32 %v244_v32, 0.0 }
  0x1c   : > { %254 = vxpose.xlu0.b32.cont [2/8] (short) %v246_v12, 128 }
  0x20   : > { %255 = vxpose.xlu0.b32.cont [3/8] (short) %v247_v16, 128 }
  0x24   : > { %256 = vxpose.xlu0.b32.cont [4/8] (short) %v248_v20, 128 }
  0x28   : > { %257 = vxpose.xlu0.b32.cont [5/8] (short) %v249_v24, 128 }
  0x2c   : > { %258 = vxpose.xlu0.b32.cont [6/8] (short) %v250_v28, 128 }
  0x30   : > { %259 = vxpose.xlu0.b32.cont [7/8] (short) %v251_v31, 128 }
  0x34   : > { %260 = vxpose.xlu0.b32.end [8/8] (short) %v252_v33, 128 }
  0x98   : > { %v269_v34 = vpop.trf.xlu0 }
  0x99   : > { %286 = vst.msk [vmem:[%s513_s27] sm:$0xff] %vm285_vm0, %v269_v34 }
  0x9c   : > { %v270_v35 = vpop.trf.xlu0 }
  0x9d   : > { %287 = vst.msk [vmem:[%s513_s27 + $0x8] sm:$0xff] %vm285_vm0, %v270_v35 }
  0xa0   : > { %v271_v36 = vpop.trf.xlu0 }
  0xa1   : > { %288 = vst.msk [vmem:[%s513_s27 + $0x10] sm:$0xff] %vm285_vm0, %v271_v36 }
  0xa4   : > { %v272_v37 = vpop.trf.xlu0 }
  0xa5   : > { %289 = vst.msk [vmem:[%s513_s27 + $0x18] sm:$0xff] %vm285_vm0, %v272_v37 }
  0xa8   : > { %v273_v38 = vpop.trf.xlu0 }
  0xa9   : > { %290 = vst.msk [vmem:[%s513_s27 + $0x20] sm:$0xff] %vm285_vm0, %v273_v38 }
  0xac   : > { %v274_v39 = vpop.trf.xlu0 }
  0xad   : > { %291 = vst.msk [vmem:[%s513_s27 + $0x28] sm:$0xff] %vm285_vm0, %v274_v39 }
  0xb0   : > { %v275_v40 = vpop.trf.xlu0 }
  0xb1   : > { %292 = vst.msk [vmem:[%s513_s27 + $0x30] sm:$0xff] %vm285_vm0, %v275_v40 }
  0xb4   : > { %v276_v41 = vpop.trf.xlu0 }
  0xb5   : > { %293 = vst.msk [vmem:[%s513_s27 + $0x38] sm:$0xff] %vm285_vm0, %v276_v41 }
  0xb8   : > { %v277_v42 = vpop.trf.xlu0 }
  0xb9   : > { %294 = vst.msk [vmem:[%s513_s27 + $0x40] sm:$0xff] %vm285_vm0, %v277_v42 }
  0xbc   : > { %v278_v43 = vpop.trf.xlu0 }
  0xbd   : > { %295 = vst.msk [vmem:[%s513_s27 + $0x48] sm:$0xff] %vm285_vm0, %v278_v43 }
  0xc0   : > { %v279_v44 = vpop.trf.xlu0 }
  0xc1   : > { %296 = vst.msk [vmem:[%s513_s27 + $0x50] sm:$0xff] %vm285_vm0, %v279_v44 }
  0xc4   : > { %v280_v45 = vpop.trf.xlu0 }
  0xc5   : > { %297 = vst.msk [vmem:[%s513_s27 + $0x58] sm:$0xff] %vm285_vm0, %v280_v45 }
  0xc8   : > { %v281_v46 = vpop.trf.xlu0 }
  0xc9   : > { %298 = vst.msk [vmem:[%s513_s27 + $0x60] sm:$0xff] %vm285_vm0, %v281_v46 }
  0xcc   : > { %v282_v47 = vpop.trf.xlu0 }
  0xcd   : > { %299 = vst.msk [vmem:[%s513_s27 + $0x68] sm:$0xff] %vm285_vm0, %v282_v47 }
  0xd0   : > { %v283_v48 = vpop.trf.xlu0 }
  0xd1   : > { %300 = vst.msk [vmem:[%s513_s27 + $0x70] sm:$0xff] %vm285_vm0, %v283_v48 }
  0xd4   : > { %v284_v49 = vpop.trf.xlu0 }
  0xd5   : > { %301 = vst.msk [vmem:[%s513_s27 + $0x78] sm:$0xff] %vm285_vm0, %v284_v49 }
  0xd6 PF: > { %s13_s14 = sadd.s32 1, %s447_s14   ;;  %s560_s12 = smov %s443_s13 }
  0xd7   : > { %p10_p5 = scmp.ge.s32.totalorder %s13_s14, 4   ;;  %s561_s13 = smov %s563_s15 }
  0xd9   :  { %12 = sbr.rel (!%p10_p5) target bundleno = 2 (0x2), region = 62 }

// kernel: _block_forward_impl.2
= control target key start
LH: loop header
LB: loop body
LE: loop exit
PB: predicated region body
PF: predicated region fallthrough
CT: control target
= control target key end

     0   :  { %s9673_s15 = smov 0   ;;  %s9675_s16 = smov 0   ;;  %s10356_s0 = inlined_call_operand.vmem [shape: f32[2,8,72,8], index: 0, kind: input, shape index: {}]   ;;  %s10357_s1 = inlined_call_operand.vmem [shape: f32[8,2,8,128], index: 1, kind: input, shape index: {}]   ;;  %s10358_s2 = inlined_call_operand.vmem [shape: f32[2,64,128], index: 2, kind: output, shape index: {0}]   ;;  %s10359_s3 = inlined_call_operand.vmem [shape: f32[2,4,1,128], index: 3, kind: output, shape index: {1}]   ;;  %s10360_s4 = inlined_call_operand.vmem [shape: f32[2,4,1,128], index: 4, kind: output, shape index: {2}]  }
   0x1   :  { %s9677_s17 = smov 0   ;;  %s9679_s18 = smov 0  }
   0x2   :  { %s9681_s19 = smov 0  }
   0x3 LB: > { %s24_s20 = sadd.s32 1, %s9638_s17  ;;  %s27_s21 = sadd.s32 1, %s9642_s18  ;;  %s9646_s19 = sphi %s9681_s19, %s15_s19   ;;  %s9642_s18 = sphi %s9679_s18, %s10364_s18   ;;  %s9638_s17 = sphi %s9677_s17, %s10363_s17   ;;  %s9634_s16 = sphi %s9675_s16, %s10362_s16   ;;  %s9630_s15 = sphi %s9673_s15, %s10361_s15  }
   0x4   : > { %p25_p0 = scmp.ge.s32.totalorder %s24_s20, 4  ;;  %p8539_p1 = scmp.ge.s32.totalorder %s9646_s19, 1 }
   0x5   : > { %p185_p2 = scmp.lt.s32.totalorder %s9646_s19, 9 }
   0x6   : > { %s10366_s20 = smov (%p25_p0, %s24_s20), 0  ;;  %s10368_s21 = smov (!%p25_p0, %s27_s21), %s9642_s18 }
   0x7   : > { %p186_p3 = pnand %p8539_p1, %p185_p2  ;;  %p29_p4 = scmp.ge.s32.totalorder %s10368_s21, 2 }
   0x8   : > { %v8550_v0 = vld [vmem:[%s10357_s1 + $0x8] sm:$0xff] (!%p186_p3)  ;;  %v8578_v1 = vld [vmem:[%s10357_s1 + $0x40] sm:$0xff] (!%p186_p3)  ;;  %p229_p5 = scmp.lt.s32.totalorder (!%p186_p3), %s9634_s16, 1  ;;  %s8546_s27 = sshll.u32 (!%p186_p3), %s9630_s15, 4  ;;  %vm269_vm0 = vcmask (!%p186_p3), 64512  }
   0x9   : > { %s10370_s21 = smov (%p29_p4, %s10368_s21), 0  ;;  %189 = sbr.rel (%p186_p3) target bundleno = 642 (0x282), region = 28 }
   0xa   : > { %v9711_v2 = vand.u32 (!%p186_p3), 4294901760, %v8550_v0  ;;  %v9713_v3 = vand.u32 (!%p186_p3), 4294901760, %v8578_v1  ;;  %v262_v41 = vld [vmem:[%s10357_s1] sm:$0xff] (!%p186_p3)  ;;  %v8582_v43 = vld [vmem:[%s10357_s1 + $0x48] sm:$0xff] (!%p186_p3)  ;;  %p246_p7 = scmp.lt.s32.totalorder (!%p186_p3), %s9630_s15, 3 }
   0xb   : > { %v9797_v44 = vand.u32 (!%p186_p3), 4294901760, %v262_v41  ;;  %v9802_v47 = vand.u32 (!%p186_p3), 4294901760, %v8582_v43 }
   0xc   : > { %8897 = vmatprep.subr.mxu1 (!%p186_p3), %v9711_v2  ;;  %9137 = vmatprep.subr.mxu0 (!%p186_p3), %v9713_v3  ;;  %v364_v4 = vsub.f32 (!%p186_p3), %v8550_v0, %v9711_v2  ;;  %v4378_v5 = vsub.f32 (!%p186_p3), %v8578_v1, %v9713_v3 }
   0xd   : > { %8898 = vmatpush3.msra.mxu1 (!%p186_p3), %v9711_v2  ;;  %9138 = vmatpush3.msra.mxu0 (!%p186_p3), %v9713_v3  ;;  %v859_v50 = vsub.f32 (!%p186_p3), %v262_v41, %v9797_v44  ;;  %v4881_v51 = vsub.f32 (!%p186_p3), %v8582_v43, %v9802_v47  ;;  %v8590_v43 = vld [vmem:[%s10357_s1 + $0x58] sm:$0xff] (!%p186_p3) }
   0xe   : > { %v9725_v6 = vand.u32 (!%p186_p3), 4294901760, %v364_v4  ;;  %v9727_v7 = vand.u32 (!%p186_p3), 4294901760, %v4378_v5 }
   0xf   : > { %v9817_v54 = vand.u32 (!%p186_p3), 4294901760, %v859_v50  ;;  %v9819_v55 = vand.u32 (!%p186_p3), 4294901760, %v4881_v51 }
  0x10   : > { %s10372_s16 = smov (!%p229_p5, %s9634_s16), 1  ;;  %v366_v8 = vsub.f32 %v364_v4, %v9725_v6  ;;  %v4380_v9 = vsub.f32 %v4378_v5, %v9727_v7 }
  0x11   : > { %s9567_s26 = smul.u32 576, %s10372_s16  ;;  %v861_v58 = vsub.f32 %v859_v50, %v9817_v54  ;;  %v4883_v59 = vsub.f32 %v4881_v51, %v9819_v55  ;;  %s8542_s23 = sshll.u32 %s10372_s16, 3 }
  0x12   : > { %v367_v14 = vand.u32 4294901760, %v366_v8  ;;  %v4381_v16 = vand.u32 4294901760, %v4380_v9  ;;  %s8544_s29 = sshll.u32 %s10372_s16, 2 }
  0x13   : > { %s233_s30 = scalar_lea.vmem %s10356_s0, %s9567_s26  ;;  %v862_v62 = vand.u32 4294901760, %v861_v58  ;;  %v4884_v63 = vand.u32 4294901760, %v4883_v59 }
  0x14   : > { %s9732_s5 = scalar_lea.vmem %s233_s30, %s8546_s27  ;;  %8902 = vmatprep.subr.mxu1 %v367_v14  ;;  %9142 = vmatprep.subr.mxu0 %v4381_v16 }
  0x15   : > { %v8548_v10 = vld [vmem:[%s9732_s5 + $0x8] sm:$0xff]  ;;  %v8576_v11 = vld [vmem:[%s9732_s5 + $0x120] sm:$0xff]  ;;  %v8549_v12 = vld [vmem:[%s9732_s5 + $0x10] sm:$0xff] }
  0x16   : > { %v271_v13 = vsel %vm269_vm0, %v8548_v10, 0  ;;  %v4285_v15 = vsel %vm269_vm0, %v8576_v11, 0  ;;  %v8577_v17 = vld [vmem:[%s9732_s5 + $0x128] sm:$0xff]  ;;  %v274_v20 = vsel %vm269_vm0, %v8549_v12, 0  ;;  %v260_v40 = vld [vmem:[%s9732_s5] sm:$0xff]  ;;  %v8581_v46 = vld [vmem:[%s9732_s5 + $0x130] sm:$0xff] }
  0x17   : > { %v9742_v18 = vand.u32 4294901760, %v271_v13  ;;  %v9744_v19 = vand.u32 4294901760, %v4285_v15  ;;  %v4288_v21 = vsel %vm269_vm0, %v8577_v17, 0  ;;  %v9748_v22 = vand.u32 4294901760, %v274_v20  ;;  %v8553_v10 = vld [vmem:[%s9732_s5 + $0x50] sm:$0xff] }
  0x18   : > { %v9750_v23 = vand.u32 4294901760, %v4288_v21  ;;  %v766_v42 = vsel %vm269_vm0, %v260_v40, 0  ;;  %v4791_v48 = vsel %vm269_vm0, %v8581_v46, 0  ;;  %v8585_v11 = vld [vmem:[%s9732_s5 + $0x170] sm:$0xff]  ;;  %v8589_v46 = vld [vmem:[%s9732_s5 + $0x178] sm:$0xff] }
  0x19   : > { %v9753_v24 = vsub.f32 %v271_v13, %v9742_v18  ;;  %v4357_v25 = vsub.f32 %v4285_v15, %v9744_v19  ;;  %v353_v26 = vsub.f32 %v274_v20, %v9748_v22  ;;  %v9799_v45 = vand.u32 4294901760, %v766_v42 }
  0x1a   : > { %v9758_v27 = vsub.f32 %v4288_v21, %v9750_v23  ;;  %v9815_v52 = vand.u32 4294901760, %v4791_v48  ;;  %v5294_v15 = vsel %vm269_vm0, %v8585_v11, 0 }
  0x1b   : > { %v9761_v28 = vand.u32 4294901760, %v9753_v24  ;;  %v4358_v29 = vand.u32 4294901760, %v4357_v25  ;;  %v354_v30 = vand.u32 4294901760, %v353_v26  ;;  %v838_v49 = vsub.f32 %v766_v42, %v9799_v45 }
  0x1c   : > { %v9764_v31 = vand.u32 4294901760, %v9758_v27  ;;  %v4870_v56 = vsub.f32 %v4791_v48, %v9815_v52 }
  0x1d   : > { %v345_v32 = vsub.f32 %v9753_v24, %v9761_v28  ;;  %v4359_v33 = vsub.f32 %v4357_v25, %v4358_v29  ;;  %v355_v34 = vsub.f32 %v353_v26, %v354_v30  ;;  %v839_v53 = vand.u32 4294901760, %v838_v49 }
  0x1e   : > { %v4369_v35 = vsub.f32 %v9758_v27, %v9764_v31  ;;  %v4871_v60 = vand.u32 4294901760, %v4870_v56 }
  0x1f   : > { %v9770_v36 = vand.u32 4294901760, %v345_v32  ;;  %v4360_v37 = vand.u32 4294901760, %v4359_v33  ;;  %v356_v38 = vand.u32 4294901760, %v355_v34  ;;  %v840_v57 = vsub.f32 %v838_v49, %v839_v53 }
  0x20   : > { %v9772_v39 = vand.u32 4294901760, %v4369_v35  ;;  %v4872_v0 = vsub.f32 %v4870_v56, %v4871_v60 }
  0x21   : > { %8899 = vmatprep.mubr.f32.mxu1 %v9770_v36  ;;  %9139 = vmatprep.mubr.f32.mxu0 %v4360_v37  ;;  %v841_v61 = vand.u32 4294901760, %v840_v57 }
  0x22   : > { %8900 = vmatmul.mubr.f32.vlgmr.msra.gmra.mrb[0].mxu1 %v356_v38  ;;  %9140 = vmatmul.mubr.f32.vlgmr.msra.gmra.mrb[0].mxu0 %v9772_v39  ;;  %v4873_v1 = vand.u32 4294901760, %v4872_v0 }
  0x23   : > { %8903 = vmatpush3.msra.mxu1 %v367_v14  ;;  %9143 = vmatpush3.msra.mxu0 %v4381_v16  ;;  %v1270_v14 = vsel %vm269_vm0, %v8553_v10, 0 }
  0x24   : > { %8904 = vmatprep.mubr.f32.mxu1 %v9742_v18  ;;  %8907 = vmatprep.subr.mxu1 %v364_v4  ;;  %v9886_v21 = vand.u32 4294901760, %v1270_v14 }
  0x25   : > { %9144 = vmatprep.mubr.f32.mxu0 %v9744_v19  ;;  %9147 = vmatprep.subr.mxu0 %v4378_v5 }
  0x2a   : > { %8905 = vmatmul.mubr.f32.vlgmr.msra.gmra.mrb[0].mxu1 %v9748_v22  ;;  %9145 = vmatmul.mubr.f32.vlgmr.msra.gmra.mrb[0].mxu0 %v9750_v23 }
  0x2b   : > { %8908 = vmatpush3.msra.mxu1 %v364_v4  ;;  %9148 = vmatpush3.msra.mxu0 %v4378_v5  ;;  %v8554_v4 = vld [vmem:[%s10357_s1 + $0x10] sm:$0xff] }
  0x2c   : > { %8909 = vmatprep.mubr.f32.mxu1 %v9753_v24  ;;  %8912 = vmatprep.subr.mxu1 %v9711_v2  ;;  %v9861_v8 = vand.u32 4294901760, %v8554_v4 }
  0x2d   : > { %9149 = vmatprep.mubr.f32.mxu0 %v4357_v25  ;;  %9152 = vmatprep.subr.mxu0 %v9713_v3 }
  0x2e   : > { %v1360_v17 = vsub.f32 %v8554_v4, %v9861_v8  ;;  %v8560_v4 = vld [vmem:[%s9732_s5 + $0x90] sm:$0xff] }
  0x30   : > { %v9891_v25 = vand.u32 4294901760, %v1360_v17 }
  0x32   : > { %8910 = vmatmul.mubr.f32.vlgmr.msra.gmra.mrb[0].mxu1 %v353_v26  ;;  %9150 = vmatmul.mubr.f32.vlgmr.msra.gmra.mrb[0].mxu0 %v9758_v27 }
  0x33   : > { %8913 = vmatpush3.msra.mxu1 %v9711_v2  ;;  %9153 = vmatpush3.msra.mxu0 %v9713_v3 }
  0x34   : > { %8914 = vmatprep.mubr.f32.mxu1 %v9761_v28  ;;  %8917 = vmatprep.subr.mxu1 %v9725_v6 }
  0x35   : > { %9154 = vmatprep.mubr.f32.mxu0 %v4358_v29  ;;  %9157 = vmatprep.subr.mxu0 %v9727_v7 }
  0x3a   : > { %8915 = vmatmul.mubr.f32.vlgmr.msra.gmra.mrb[0].mxu1 %v354_v30  ;;  %9155 = vmatmul.mubr.f32.vlgmr.msra.gmra.mrb[0].mxu0 %v9764_v31 }
  0x3b   : > { %8918 = vmatpush3.msra.mxu1 %v9725_v6  ;;  %9158 = vmatpush3.msra.mxu0 %v9727_v7  ;;  %v8586_v6 = vld [vmem:[%s10357_s1 + $0x50] sm:$0xff] }
  0x3c   : > { %8919 = vmatprep.mubr.f32.mxu1 %v9742_v18  ;;  %8922 = vmatprep.subr.mxu1 %v9711_v2  ;;  %v9867_v12 = vand.u32 4294901760, %v8586_v6 }
  0x3d   : > { %9159 = vmatprep.mubr.f32.mxu0 %v9744_v19  ;;  %9162 = vmatprep.subr.mxu0 %v9713_v3 }
  0x3e   : > { %v5384_v20 = vsub.f32 %v8586_v6, %v9867_v12  ;;  %v8562_v6 = vld [vmem:[%s10357_s1 + $0x20] sm:$0xff] }
  0x3f   : > { %v10019_v10 = vand.u32 4294901760, %v8562_v6 }
  0x42   : > { %8920 = vmatmul.mubr.f32.vlgmr.msra.gmra.mrb[0].mxu1 %v9748_v22  ;;  %9160 = vmatmul.mubr.f32.vlgmr.msra.gmra.mrb[0].mxu0 %v9750_v23 }
  0x43   : > { %8923 = vmatpush3.msra.mxu1 %v9711_v2  ;;  %9163 = vmatpush3.msra.mxu0 %v9713_v3  ;;  %v8552_v2 = vld [vmem:[%s9732_s5 + $0x48] sm:$0xff] }
  0x44   : > { %8924 = vmatprep.mubr.f32.mxu1 %v9742_v18  ;;  %8927 = vmatprep.subr.mxu1 %v9797_v44  ;;  %v8584_v3 = vld [vmem:[%s9732_s5 + $0x168] sm:$0xff]  ;;  %v1267_v5 = vsel %vm269_vm0, %v8552_v2, 0 }
  0x45   : > { %9164 = vmatprep.mubr.f32.mxu0 %v9744_v19  ;;  %9167 = vmatprep.subr.mxu0 %v9802_v47  ;;  %v5291_v7 = vsel %vm269_vm0, %v8584_v3, 0  ;;  %v9863_v9 = vand.u32 4294901760, %v1267_v5 }
  0x46   : > { %v9869_v13 = vand.u32 4294901760, %v5291_v7 }
  0x47   : > { %v9879_v16 = vsub.f32 %v1267_v5, %v9863_v9  ;;  %v8592_v5 = vld [vmem:[%s9732_s5 + $0x1b0] sm:$0xff] }
  0x48   : > { %v5363_v19 = vsub.f32 %v5291_v7, %v9869_v13  ;;  %v2273_v7 = vsel %vm269_vm0, %v8560_v4, 0 }
  0x49   : > { %v10021_v11 = vand.u32 4294901760, %v2273_v7 }
  0x4a   : > { %8925 = vmatmul.mubr.f32.vlgmr.msra.gmra.mrb[0].mxu1 %v9748_v22  ;;  %9165 = vmatmul.mubr.f32.vlgmr.msra.gmra.mrb[0].mxu0 %v9750_v23  ;;  %v9888_v22 = vand.u32 4294901760, %v5294_v15  ;;  %v5364_v26 = vand.u32 4294901760, %v5363_v19 }
  0x4b   : > { %8928 = vmatpush3.msra.mxu1 %v9797_v44  ;;  %9168 = vmatpush3.msra.mxu0 %v9802_v47 }
  0x4c   : > { %8929 = vmatprep.mubr.f32.mxu1 %v841_v61  ;;  %8932 = vmatprep.subr.mxu1 %v862_v62  ;;  %v9901_v29 = vsub.f32 %v5294_v15, %v9888_v22  ;;  %v5365_v32 = vsub.f32 %v5363_v19, %v5364_v26 }
  0x4d   : > { %9169 = vmatprep.mubr.f32.mxu0 %v9772_v39  ;;  %9172 = vmatprep.subr.mxu0 %v4884_v63 }
  0x4e   : > { %v9916_v35 = vand.u32 4294901760, %v9901_v29  ;;  %v5366_v38 = vand.u32 4294901760, %v5365_v32 }
  0x50   : > { %v5375_v40 = vsub.f32 %v9901_v29, %v9916_v35 }
  0x52   : > { %8930 = vmatmul.mubr.f32.vlgmr.msra.gmra.mrb[0].mxu1 %v9770_v36  ;;  %9170 = vmatmul.mubr.f32.vlgmr.msra.gmra.mrb[0].mxu0 %v4873_v1  ;;  %v9928_v42 = vand.u32 4294901760, %v5375_v40 }
  0x53   : > { %8933 = vmatpush3.msra.mxu1 %v862_v62  ;;  %9173 = vmatpush3.msra.mxu0 %v4884_v63 }
  0x54   : > { %8934 = vmatprep.mubr.f32.mxu1 %v9799_v45  ;;  %8937 = vmatprep.subr.mxu1 %v859_v50 }
  0x55   : > { %9174 = vmatprep.mubr.f32.mxu0 %v9750_v23  ;;  %9177 = vmatprep.subr.mxu0 %v4881_v51 }
  0x5a   : > { %8935 = vmatmul.mubr.f32.vlgmr.msra.gmra.mrb[0].mxu1 %v9742_v18  ;;  %9175 = vmatmul.mubr.f32.vlgmr.msra.gmra.mrb[0].mxu0 %v9815_v52 }
  0x5b   : > { %8938 = vmatpush3.msra.mxu1 %v859_v50  ;;  %9178 = vmatpush3.msra.mxu0 %v4881_v51 }
  0x5c   : > { %8939 = vmatprep.mubr.f32.mxu1 %v838_v49  ;;  %8942 = vmatprep.subr.mxu1 %v9797_v44  ;;  %v5797_v49 = vsel %vm269_vm0, %v8589_v46, 0 }
  0x5d   : > { %9179 = vmatprep.mubr.f32.mxu0 %v9758_v27  ;;  %9182 = vmatprep.subr.mxu0 %v9802_v47  ;;  %v9893_v27 = vand.u32 4294901760, %v5384_v20 }
  0x5f   : > { %v5386_v33 = vsub.f32 %v5384_v20, %v9893_v27 }
  0x61   : > { %v5387_v39 = vand.u32 4294901760, %v5386_v33 }
  0x62   : > { %8940 = vmatmul.mubr.f32.vlgmr.msra.gmra.mrb[0].mxu1 %v9753_v24  ;;  %9180 = vmatmul.mubr.f32.vlgmr.msra.gmra.mrb[0].mxu0 %v4870_v56  ;;  %v1340_v24 = vand.u32 4294901760, %v9879_v16 }
  0x63   : > { %8943 = vmatpush3.msra.mxu1 %v9797_v44  ;;  %9183 = vmatpush3.msra.mxu0 %v9802_v47 }
  0x64   : > { %8944 = vmatprep.mubr.f32.mxu1 %v839_v53  ;;  %8947 = vmatprep.subr.mxu1 %v9817_v54  ;;  %v1341_v30 = vsub.f32 %v9879_v16, %v1340_v24  ;;  %v9971_v53 = vand.u32 4294901760, %v5797_v49 }
  0x65   : > { %9184 = vmatprep.mubr.f32.mxu0 %v9764_v31  ;;  %9187 = vmatprep.subr.mxu0 %v9819_v55  ;;  %v1362_v31 = vsub.f32 %v1360_v17, %v9891_v25 }
  0x66   : > { %v1342_v36 = vand.u32 4294901760, %v1341_v30  ;;  %v5876_v57 = vsub.f32 %v5797_v49, %v9971_v53 }
  0x67   : > { %v1363_v37 = vand.u32 4294901760, %v1362_v31 }
  0x68   : > { %v5877_v61 = vand.u32 4294901760, %v5876_v57 }
  0x6a   : > { %8945 = vmatmul.mubr.f32.vlgmr.msra.gmra.mrb[0].mxu1 %v9761_v28  ;;  %9185 = vmatmul.mubr.f32.vlgmr.msra.gmra.mrb[0].mxu0 %v4871_v60  ;;  %v9898_v28 = vsub.f32 %v1270_v14, %v9886_v21  ;;  %v5878_v1 = vsub.f32 %v5876_v57, %v5877_v61 }
  0x6b   : > { %8948 = vmatpush3.msra.mxu1 %v9817_v54  ;;  %9188 = vmatpush3.msra.mxu0 %v9819_v55 }
  0x6c   : > { %8949 = vmatprep.mubr.f32.mxu1 %v9799_v45  ;;  %8952 = vmatprep.subr.mxu1 %v9797_v44  ;;  %v9913_v34 = vand.u32 4294901760, %v9898_v28  ;;  %v5879_v3 = vand.u32 4294901760, %v5878_v1 }
  0x6d   : > { %9189 = vmatprep.mubr.f32.mxu0 %v9750_v23  ;;  %9192 = vmatprep.subr.mxu0 %v9802_v47 }
  0x72   : > { %8950 = vmatmul.mubr.f32.vlgmr.msra.gmra.mrb[0].mxu1 %v9742_v18  ;;  %9190 = vmatmul.mubr.f32.vlgmr.msra.gmra.mrb[0].mxu0 %v9815_v52 }
  0x73   : > { %8953 = vmatpush3.msra.mxu1 %v9797_v44  ;;  %9193 = vmatpush3.msra.mxu0 %v9802_v47  ;;  %v9955_v47 = vand.u32 4294901760, %v8590_v43 }
  0x74   : > { %8954 = vmatprep.mubr.f32.mxu1 %v9799_v45  ;;  %8957 = vmatprep.subr.mxu1 %v9861_v8  ;;  %v8557_v45 = vld [vmem:[%s9732_s5 + $0x58] sm:$0xff] }
  0x75   : > { %9194 = vmatprep.mubr.f32.mxu0 %v9750_v23  ;;  %9197 = vmatprep.subr.mxu0 %v9867_v12  ;;  %v1351_v23 = vsub.f32 %v9898_v28, %v9913_v34  ;;  %v1773_v48 = vsel %vm269_vm0, %v8557_v45, 0  ;;  %v5887_v51 = vsub.f32 %v8590_v43, %v9955_v47  ;;  %v8598_v45 = vld [vmem:[%s10357_s1 + $0x68] sm:$0xff] }
  0x76   : > { %v10112_v49 = vand.u32 4294901760, %v8598_v45 }
  0x77   : > { %v9926_v41 = vand.u32 4294901760, %v1351_v23  ;;  %v9975_v55 = vand.u32 4294901760, %v5887_v51 }
  0x79   : > { %v5889_v59 = vsub.f32 %v5887_v51, %v9975_v55 }
  0x7a   : > { %8955 = vmatmul.mubr.f32.vlgmr.msra.gmra.mrb[0].mxu1 %v9742_v18  ;;  %9195 = vmatmul.mubr.f32.vlgmr.msra.gmra.mrb[0].mxu0 %v9815_v52  ;;  %v8558_v18 = vld [vmem:[%s10357_s1 + $0x18] sm:$0xff]  ;;  %v9969_v52 = vand.u32 4294901760, %v1773_v48 }
  0x7b   : > { %8958 = vmatpush3.msra.mxu1 %v9861_v8  ;;  %9198 = vmatpush3.msra.mxu0 %v9867_v12  ;;  %v9951_v44 = vand.u32 4294901760, %v8558_v18  ;;  %v5890_v63 = vand.u32 4294901760, %v5889_v59 }
  0x7c   : > { %8959 = vmatprep.mubr.f32.mxu1 %v1342_v36  ;;  %8962 = vmatprep.subr.mxu1 %v1363_v37  ;;  %v1852_v56 = vsub.f32 %v1773_v48, %v9969_v52  ;;  %v8597_v48 = vld [vmem:[%s9732_s5 + $0x1c0] sm:$0xff] }
  0x7d   : > { %9199 = vmatprep.mubr.f32.mxu0 %v5366_v38  ;;  %9202 = vmatprep.subr.mxu0 %v5387_v39  ;;  %v1863_v50 = vsub.f32 %v8558_v18, %v9951_v44 }
  0x7e   : > { %v1853_v60 = vand.u32 4294901760, %v1852_v56 }
  0x7f   : > { %v9973_v54 = vand.u32 4294901760, %v1863_v50 }
  0x80   : > { %v1854_v0 = vsub.f32 %v1852_v56, %v1853_v60 }
  0x81   : > { %v1865_v58 = vsub.f32 %v1863_v50, %v9973_v54 }
  0x82   : > { %8960 = vmatmul.mubr.f32.vlgmr.msra.gmra.mrb[0].mxu1 %v9926_v41  ;;  %9200 = vmatmul.mubr.f32.vlgmr.msra.gmra.mrb[0].mxu0 %v9928_v42  ;;  %v1855_v2 = vand.u32 4294901760, %v1854_v0 }
  0x83   : > { %8963 = vmatpush3.msra.mxu1 %v1363_v37  ;;  %9203 = vmatpush3.msra.mxu0 %v5387_v39  ;;  %v1866_v62 = vand.u32 4294901760, %v1865_v58 }
  0x84   : > { %8964 = vmatprep.mubr.f32.mxu1 %v9863_v9  ;;  %8967 = vmatprep.subr.mxu1 %v1360_v17 }
  0x85   : > { %9204 = vmatprep.mubr.f32.mxu0 %v9869_v13  ;;  %9207 = vmatprep.subr.mxu0 %v5384_v20 }
  0x8a   : > { %8965 = vmatmul.mubr.f32.vlgmr.msra.gmra.mrb[0].mxu1 %v9886_v21  ;;  %9205 = vmatmul.mubr.f32.vlgmr.msra.gmra.mrb[0].mxu0 %v9888_v22 }
  0x8b   : > { %8968 = vmatpush3.msra.mxu1 %v1360_v17  ;;  %9208 = vmatpush3.msra.mxu0 %v5384_v20  ;;  %v2366_v20 = vsub.f32 %v8562_v6, %v10019_v10  ;;  %v8568_v6 = vld [vmem:[%s9732_s5 + $0xd8] sm:$0xff] }
  0x8c   : > { %8969 = vmatprep.mubr.f32.mxu1 %v9879_v16  ;;  %8972 = vmatprep.subr.mxu1 %v9861_v8 }
  0x8d   : > { %9209 = vmatprep.mubr.f32.mxu0 %v5363_v19  ;;  %9212 = vmatprep.subr.mxu0 %v9867_v12  ;;  %v10036_v19 = vsub.f32 %v2273_v7, %v10021_v11  ;;  %v8600_v7 = vld [vmem:[%s9732_s5 + $0x1f8] sm:$0xff] }
  0x92   : > { %8970 = vmatmul.mubr.f32.vlgmr.msra.gmra.mrb[0].mxu1 %v9898_v28  ;;  %9210 = vmatmul.mubr.f32.vlgmr.msra.gmra.mrb[0].mxu0 %v9901_v29 }
  0x93   : > { %8973 = vmatpush3.msra.mxu1 %v9861_v8  ;;  %9213 = vmatpush3.msra.mxu0 %v9867_v12 }
  0x94   : > { %8974 = vmatprep.mubr.f32.mxu1 %v1340_v24  ;;  %8977 = vmatprep.subr.mxu1 %v9891_v25 }
  0x95   : > { %9214 = vmatprep.mubr.f32.mxu0 %v5364_v26  ;;  %9217 = vmatprep.subr.mxu0 %v9893_v27 }
  0x9a   : > { %8975 = vmatmul.mubr.f32.vlgmr.msra.gmra.mrb[0].mxu1 %v9913_v34  ;;  %9215 = vmatmul.mubr.f32.vlgmr.msra.gmra.mrb[0].mxu0 %v9916_v35 }
  0x9b   : > { %8978 = vmatpush3.msra.mxu1 %v9891_v25  ;;  %9218 = vmatpush3.msra.mxu0 %v9893_v27 }
  0x9c   : > { %8979 = vmatprep.mubr.f32.mxu1 %v9863_v9  ;;  %8982 = vmatprep.subr.mxu1 %v9861_v8 }
  0x9d   : > { %9219 = vmatprep.mubr.f32.mxu0 %v9869_v13  ;;  %9222 = vmatprep.subr.mxu0 %v9867_v12 }
  0xa2   : > { %8980 = vmatmul.mubr.f32.vlgmr.msra.gmra.mrb[0].mxu1 %v9886_v21  ;;  %9220 = vmatmul.mubr.f32.vlgmr.msra.gmra.mrb[0].mxu0 %v9888_v22 }
  0xa3   : > { %8983 = vmatpush3.msra.mxu1 %v9861_v8  ;;  %9223 = vmatpush3.msra.mxu0 %v9867_v12  ;;  %v8594_v8 = vld [vmem:[%s10357_s1 + $0x60] sm:$0xff]  ;;  %v8561_v12 = vld [vmem:[%s9732_s5 + $0x98] sm:$0xff] }
  0xa4   : > { %8984 = vmatprep.mubr.f32.mxu1 %v9863_v9  ;;  %8987 = vmatprep.subr.mxu1 %v9951_v44  ;;  %v6297_v9 = vsel %vm269_vm0, %v8592_v5, 0  ;;  %v10025_v14 = vand.u32 4294901760, %v8594_v8  ;;  %v2276_v16 = vsel %vm269_vm0, %v8561_v12, 0 }
  0xa5   : > { %9224 = vmatprep.mubr.f32.mxu0 %v9869_v13  ;;  %9227 = vmatprep.subr.mxu0 %v9955_v47  ;;  %v8593_v13 = vld [vmem:[%s9732_s5 + $0x1b8] sm:$0xff]  ;;  %v10027_v15 = vand.u32 4294901760, %v6297_v9  ;;  %v10043_v26 = vand.u32 4294901760, %v2276_v16 }
  0xa6   : > { %v6300_v17 = vsel %vm269_vm0, %v8593_v13, 0  ;;  %v6390_v25 = vsub.f32 %v8594_v8, %v10025_v14  ;;  %v8570_v8 = vld [vmem:[%s10357_s1 + $0x30] sm:$0xff] }
  0xa7   : > { %v6369_v24 = vsub.f32 %v6297_v9, %v10027_v15  ;;  %v10045_v27 = vand.u32 4294901760, %v6300_v17  ;;  %v10055_v32 = vsub.f32 %v2276_v16, %v10043_v26  ;;  %v3279_v9 = vsel %vm269_vm0, %v8568_v6, 0 }
  0xa8   : > { %v10050_v31 = vand.u32 4294901760, %v6390_v25  ;;  %v10176_v12 = vand.u32 4294901760, %v8570_v8  ;;  %v10178_v13 = vand.u32 4294901760, %v3279_v9 }
  0xa9   : > { %v6370_v30 = vand.u32 4294901760, %v6369_v24  ;;  %v10058_v33 = vsub.f32 %v6300_v17, %v10045_v27  ;;  %v10070_v38 = vand.u32 4294901760, %v10055_v32 }
  0xaa   : > { %8985 = vmatmul.mubr.f32.vlgmr.msra.gmra.mrb[0].mxu1 %v9886_v21  ;;  %9225 = vmatmul.mubr.f32.vlgmr.msra.gmra.mrb[0].mxu0 %v9888_v22  ;;  %v6392_v37 = vsub.f32 %v6390_v25, %v10050_v31 }
  0xab   : > { %8988 = vmatpush3.msra.mxu1 %v9951_v44  ;;  %9228 = vmatpush3.msra.mxu0 %v9955_v47  ;;  %v6371_v36 = vsub.f32 %v6369_v24, %v6370_v30  ;;  %v10073_v39 = vand.u32 4294901760, %v10058_v33 }
  0xac   : > { %8989 = vmatprep.mubr.f32.mxu1 %v9926_v41  ;;  %8992 = vmatprep.subr.mxu1 %v1866_v62  ;;  %v6393_v41 = vand.u32 4294901760, %v6392_v37 }
  0xad   : > { %9229 = vmatprep.mubr.f32.mxu0 %v9928_v42  ;;  %9232 = vmatprep.subr.mxu0 %v5890_v63  ;;  %v6372_v40 = vand.u32 4294901760, %v6371_v36  ;;  %v6381_v42 = vsub.f32 %v10058_v33, %v10073_v39 }
  0xaf   : > { %v10085_v43 = vand.u32 4294901760, %v6381_v42 }
  0xb2   : > { %8990 = vmatmul.mubr.f32.vlgmr.msra.gmra.mrb[0].mxu1 %v1855_v2  ;;  %9230 = vmatmul.mubr.f32.vlgmr.msra.gmra.mrb[0].mxu0 %v5879_v3 }
  0xb3   : > { %8993 = vmatpush3.msra.mxu1 %v1866_v62  ;;  %9233 = vmatpush3.msra.mxu0 %v5890_v63 }
  0xb4   : > { %8994 = vmatprep.mubr.f32.mxu1 %v9886_v21  ;;  %8997 = vmatprep.subr.mxu1 %v1863_v50 }
  0xb5   : > { %9234 = vmatprep.mubr.f32.mxu0 %v9888_v22  ;;  %9237 = vmatprep.subr.mxu0 %v5887_v51 }
  0xba   : > { %8995 = vmatmul.mubr.f32.vlgmr.msra.gmra.mrb[0].mxu1 %v9969_v52  ;;  %9235 = vmatmul.mubr.f32.vlgmr.msra.gmra.mrb[0].mxu0 %v9971_v53 }
  0xbb   : > { %8998 = vmatpush3.msra.mxu1 %v1863_v50  ;;  %9238 = vmatpush3.msra.mxu0 %v5887_v51  ;;  %v6803_v51 = vsel %vm269_vm0, %v8597_v48, 0 }
  0xbc   : > { %8999 = vmatprep.mubr.f32.mxu1 %v9898_v28  ;;  %9002 = vmatprep.subr.mxu1 %v9951_v44  ;;  %v2346_v28 = vand.u32 4294901760, %v10036_v19 }
  0xbd   : > { %9239 = vmatprep.mubr.f32.mxu0 %v9901_v29  ;;  %9242 = vmatprep.subr.mxu0 %v9955_v47  ;;  %v10048_v29 = vand.u32 4294901760, %v2366_v20 }
  0xc2   : > { %9000 = vmatmul.mubr.f32.vlgmr.msra.gmra.mrb[0].mxu1 %v1852_v56  ;;  %9240 = vmatmul.mubr.f32.vlgmr.msra.gmra.mrb[0].mxu0 %v5876_v57 }
  0xc3   : > { %9003 = vmatpush3.msra.mxu1 %v9951_v44  ;;  %9243 = vmatpush3.msra.mxu0 %v9955_v47 }
  0xc4   : > { %9004 = vmatprep.mubr.f32.mxu1 %v9913_v34  ;;  %9007 = vmatprep.subr.mxu1 %v9973_v54  ;;  %v2347_v34 = vsub.f32 %v10036_v19, %v2346_v28 }
  0xc5   : > { %9244 = vmatprep.mubr.f32.mxu0 %v9916_v35  ;;  %9247 = vmatprep.subr.mxu0 %v9975_v55  ;;  %v2368_v35 = vsub.f32 %v2366_v20, %v10048_v29 }
  0xc7   : > { %v2369_v23 = vand.u32 4294901760, %v2368_v35 }
  0xca   : > { %9005 = vmatmul.mubr.f32.vlgmr.msra.gmra.mrb[0].mxu1 %v1853_v60  ;;  %9245 = vmatmul.mubr.f32.vlgmr.msra.gmra.mrb[0].mxu0 %v5877_v61 }
  0xcb   : > { %9008 = vmatpush3.msra.mxu1 %v9973_v54  ;;  %9248 = vmatpush3.msra.mxu0 %v9975_v55  ;;  %v10128_v55 = vand.u32 4294901760, %v6803_v51 }
  0xcc   : > { %9009 = vmatprep.mubr.f32.mxu1 %v9886_v21  ;;  %9012 = vmatprep.subr.mxu1 %v9951_v44 }
  0xcd   : > { %9249 = vmatprep.mubr.f32.mxu0 %v9888_v22  ;;  %9252 = vmatprep.subr.mxu0 %v9955_v47  ;;  %v6882_v59 = vsub.f32 %v6803_v51, %v10128_v55 }
  0xcf   : > { %v6883_v63 = vand.u32 4294901760, %v6882_v59 }
  0xd1   : > { %v6884_v3 = vsub.f32 %v6882_v59, %v6883_v63 }
  0xd2   : > { %9010 = vmatmul.mubr.f32.vlgmr.msra.gmra.mrb[0].mxu1 %v9969_v52  ;;  %9250 = vmatmul.mubr.f32.vlgmr.msra.gmra.mrb[0].mxu0 %v9971_v53 }
  0xd3   : > { %9013 = vmatpush3.msra.mxu1 %v9951_v44  ;;  %9253 = vmatpush3.msra.mxu0 %v9955_v47  ;;  %v8566_v44 = vld [vmem:[%s10357_s1 + $0x28] sm:$0xff]  ;;  %v8565_v47 = vld [vmem:[%s9732_s5 + $0xa0] sm:$0xff]  ;;  %v6885_v5 = vand.u32 4294901760, %v6884_v3 }
  0xd4   : > { %9014 = vmatprep.mubr.f32.mxu1 %v9886_v21  ;;  %9017 = vmatprep.subr.mxu1 %v10019_v10  ;;  %v2348_v21 = vand.u32 4294901760, %v2347_v34  ;;  %v10108_v46 = vand.u32 4294901760, %v8566_v44  ;;  %v2779_v50 = vsel %vm269_vm0, %v8565_v47, 0  ;;  %v8606_v47 = vld [vmem:[%s10357_s1 + $0x78] sm:$0xff] }
  0xd5   : > { %9254 = vmatprep.mubr.f32.mxu0 %v9888_v22  ;;  %9257 = vmatprep.subr.mxu0 %v10025_v14  ;;  %v2357_v22 = vsub.f32 %v10055_v32, %v10070_v38  ;;  %v10126_v54 = vand.u32 4294901760, %v2779_v50  ;;  %v10269_v51 = vand.u32 4294901760, %v8606_v47 }
  0xd7   : > { %v10083_v18 = vand.u32 4294901760, %v2357_v22  ;;  %v2858_v58 = vsub.f32 %v2779_v50, %v10126_v54  ;;  %v8605_v50 = vld [vmem:[%s9732_s5 + $0x208] sm:$0xff] }
  0xd9   : > { %v2859_v62 = vand.u32 4294901760, %v2858_v58 }
  0xda   : > { %9015 = vmatmul.mubr.f32.vlgmr.msra.gmra.mrb[0].mxu1 %v9969_v52  ;;  %9255 = vmatmul.mubr.f32.vlgmr.msra.gmra.mrb[0].mxu0 %v9971_v53  ;;  %v2869_v52 = vsub.f32 %v8566_v44, %v10108_v46  ;;  %v6893_v53 = vsub.f32 %v8598_v45, %v10112_v49 }
  0xdb   : > { %9018 = vmatpush3.msra.mxu1 %v10019_v10  ;;  %9258 = vmatpush3.msra.mxu0 %v10025_v14  ;;  %v2860_v2 = vsub.f32 %v2858_v58, %v2859_v62 }
  0xdc   : > { %9019 = vmatprep.mubr.f32.mxu1 %v2348_v21  ;;  %9022 = vmatprep.subr.mxu1 %v2369_v23  ;;  %v10130_v56 = vand.u32 4294901760, %v2869_v52  ;;  %v10132_v57 = vand.u32 4294901760, %v6893_v53 }
  0xdd   : > { %9259 = vmatprep.mubr.f32.mxu0 %v6372_v40  ;;  %9262 = vmatprep.subr.mxu0 %v6393_v41  ;;  %v2861_v4 = vand.u32 4294901760, %v2860_v2 }
  0xde   : > { %v2871_v60 = vsub.f32 %v2869_v52, %v10130_v56  ;;  %v6895_v61 = vsub.f32 %v6893_v53, %v10132_v57 }
  0xe0   : > { %v2872_v0 = vand.u32 4294901760, %v2871_v60  ;;  %v6896_v1 = vand.u32 4294901760, %v6895_v61 }
  0xe2   : > { %9020 = vmatmul.mubr.f32.vlgmr.msra.gmra.mrb[0].mxu1 %v10083_v18  ;;  %9260 = vmatmul.mubr.f32.vlgmr.msra.gmra.mrb[0].mxu0 %v10085_v43 }
  0xe3   : > { %9023 = vmatpush3.msra.mxu1 %v2369_v23  ;;  %9263 = vmatpush3.msra.mxu0 %v6393_v41 }
  0xe4   : > { %9024 = vmatprep.mubr.f32.mxu1 %v10021_v11  ;;  %9027 = vmatprep.subr.mxu1 %v2366_v20 }
  0xe5   : > { %9264 = vmatprep.mubr.f32.mxu0 %v10027_v15  ;;  %9267 = vmatprep.subr.mxu0 %v6390_v25 }
  0xea   : > { %9025 = vmatmul.mubr.f32.vlgmr.msra.gmra.mrb[0].mxu1 %v10043_v26  ;;  %9265 = vmatmul.mubr.f32.vlgmr.msra.gmra.mrb[0].mxu0 %v10045_v27 }
  0xeb   : > { %9028 = vmatpush3.msra.mxu1 %v2366_v20  ;;  %9268 = vmatpush3.msra.mxu0 %v6390_v25  ;;  %v3372_v25 = vsub.f32 %v8570_v8, %v10176_v12 }
  0xec   : > { %9029 = vmatprep.mubr.f32.mxu1 %v10036_v19  ;;  %9032 = vmatprep.subr.mxu1 %v10019_v10 }
  0xed   : > { %9269 = vmatprep.mubr.f32.mxu0 %v6369_v24  ;;  %9272 = vmatprep.subr.mxu0 %v10025_v14  ;;  %v10193_v24 = vsub.f32 %v3279_v9, %v10178_v13 }
  0xf2   : > { %9030 = vmatmul.mubr.f32.vlgmr.msra.gmra.mrb[0].mxu1 %v10055_v32  ;;  %9270 = vmatmul.mubr.f32.vlgmr.msra.gmra.mrb[0].mxu0 %v10058_v33 }
  0xf3   : > { %9033 = vmatpush3.msra.mxu1 %v10019_v10  ;;  %9273 = vmatpush3.msra.mxu0 %v10025_v14 }
  0xf4   : > { %9034 = vmatprep.mubr.f32.mxu1 %v2346_v28  ;;  %9037 = vmatprep.subr.mxu1 %v10048_v29 }
  0xf5   : > { %9274 = vmatprep.mubr.f32.mxu0 %v6370_v30  ;;  %9277 = vmatprep.subr.mxu0 %v10050_v31 }
  0xfa   : > { %9035 = vmatmul.mubr.f32.vlgmr.msra.gmra.mrb[0].mxu1 %v10070_v38  ;;  %9275 = vmatmul.mubr.f32.vlgmr.msra.gmra.mrb[0].mxu0 %v10073_v39 }
  0xfb   : > { %9038 = vmatpush3.msra.mxu1 %v10048_v29  ;;  %9278 = vmatpush3.msra.mxu0 %v10050_v31 }
  0xfc   : > { %9039 = vmatprep.mubr.f32.mxu1 %v10021_v11  ;;  %9042 = vmatprep.subr.mxu1 %v10019_v10 }
  0xfd   : > { %9279 = vmatprep.mubr.f32.mxu0 %v10027_v15  ;;  %9282 = vmatprep.subr.mxu0 %v10025_v14 }
 0x102   : > { %9040 = vmatmul.mubr.f32.vlgmr.msra.gmra.mrb[0].mxu1 %v10043_v26  ;;  %9280 = vmatmul.mubr.f32.vlgmr.msra.gmra.mrb[0].mxu0 %v10045_v27 }
 0x103   : > { %9043 = vmatpush3.msra.mxu1 %v10019_v10  ;;  %9283 = vmatpush3.msra.mxu0 %v10025_v14  ;;  %v8602_v10 = vld [vmem:[%s10357_s1 + $0x70] sm:$0xff]  ;;  %v8569_v14 = vld [vmem:[%s9732_s5 + $0xe0] sm:$0xff] }
 0x104   : > { %9044 = vmatprep.mubr.f32.mxu1 %v10021_v11  ;;  %9047 = vmatprep.subr.mxu1 %v10108_v46  ;;  %v7303_v11 = vsel %vm269_vm0, %v8600_v7, 0  ;;  %v10182_v16 = vand.u32 4294901760, %v8602_v10  ;;  %v3282_v19 = vsel %vm269_vm0, %v8569_v14, 0 }
 0x105   : > { %9284 = vmatprep.mubr.f32.mxu0 %v10027_v15  ;;  %9287 = vmatprep.subr.mxu0 %v10112_v49  ;;  %v8601_v15 = vld [vmem:[%s9732_s5 + $0x200] sm:$0xff]  ;;  %v10184_v17 = vand.u32 4294901760, %v7303_v11  ;;  %v10200_v30 = vand.u32 4294901760, %v3282_v19 }
 0x106   : > { %v7306_v20 = vsel %vm269_vm0, %v8601_v15, 0  ;;  %v7396_v29 = vsub.f32 %v8602_v10, %v10182_v16 }
 0x107   : > { %v7375_v28 = vsub.f32 %v7303_v11, %v10184_v17  ;;  %v10202_v31 = vand.u32 4294901760, %v7306_v20  ;;  %v10212_v36 = vsub.f32 %v3282_v19, %v10200_v30 }
 0x108   : > { %v10207_v35 = vand.u32 4294901760, %v7396_v29 }
 0x109   : > { %v7376_v34 = vand.u32 4294901760, %v7375_v28  ;;  %v10215_v37 = vsub.f32 %v7306_v20, %v10202_v31  ;;  %v10227_v40 = vand.u32 4294901760, %v10212_v36 }
 0x10a   : > { %9045 = vmatmul.mubr.f32.vlgmr.msra.gmra.mrb[0].mxu1 %v10043_v26  ;;  %9285 = vmatmul.mubr.f32.vlgmr.msra.gmra.mrb[0].mxu0 %v10045_v27  ;;  %v7398_v23 = vsub.f32 %v7396_v29, %v10207_v35 }
 0x10b   : > { %9048 = vmatpush3.msra.mxu1 %v10108_v46  ;;  %9288 = vmatpush3.msra.mxu0 %v10112_v49  ;;  %v7377_v21 = vsub.f32 %v7375_v28, %v7376_v34  ;;  %v10230_v41 = vand.u32 4294901760, %v10215_v37 }
 0x10c   : > { %9049 = vmatprep.mubr.f32.mxu1 %v10083_v18  ;;  %9052 = vmatprep.subr.mxu1 %v2872_v0  ;;  %v7399_v18 = vand.u32 4294901760, %v7398_v23 }
 0x10d   : > { %9289 = vmatprep.mubr.f32.mxu0 %v10085_v43  ;;  %9292 = vmatprep.subr.mxu0 %v6896_v1  ;;  %v7378_v42 = vand.u32 4294901760, %v7377_v21  ;;  %v7387_v43 = vsub.f32 %v10215_v37, %v10230_v41 }
 0x10f   : > { %v10242_v45 = vand.u32 4294901760, %v7387_v43 }
 0x112   : > { %9050 = vmatmul.mubr.f32.vlgmr.msra.gmra.mrb[0].mxu1 %v2861_v4  ;;  %9290 = vmatmul.mubr.f32.vlgmr.msra.gmra.mrb[0].mxu0 %v6885_v5 }
 0x113   : > { %9053 = vmatpush3.msra.mxu1 %v2872_v0  ;;  %9293 = vmatpush3.msra.mxu0 %v6896_v1 }
 0x114   : > { %9054 = vmatprep.mubr.f32.mxu1 %v10043_v26  ;;  %9057 = vmatprep.subr.mxu1 %v2869_v52 }
 0x115   : > { %9294 = vmatprep.mubr.f32.mxu0 %v10045_v27  ;;  %9297 = vmatprep.subr.mxu0 %v6893_v53 }
 0x11a   : > { %9055 = vmatmul.mubr.f32.vlgmr.msra.gmra.mrb[0].mxu1 %v10126_v54  ;;  %9295 = vmatmul.mubr.f32.vlgmr.msra.gmra.mrb[0].mxu0 %v10128_v55 }
 0x11b   : > { %9058 = vmatpush3.msra.mxu1 %v2869_v52  ;;  %9298 = vmatpush3.msra.mxu0 %v6893_v53  ;;  %v7809_v53 = vsel %vm269_vm0, %v8605_v50, 0 }
 0x11c   : > { %9059 = vmatprep.mubr.f32.mxu1 %v10055_v32  ;;  %9062 = vmatprep.subr.mxu1 %v10108_v46  ;;  %v3352_v32 = vand.u32 4294901760, %v10193_v24 }
 0x11d   : > { %9299 = vmatprep.mubr.f32.mxu0 %v10058_v33  ;;  %9302 = vmatprep.subr.mxu0 %v10112_v49  ;;  %v10205_v33 = vand.u32 4294901760, %v3372_v25 }
 0x122   : > { %9060 = vmatmul.mubr.f32.vlgmr.msra.gmra.mrb[0].mxu1 %v2858_v58  ;;  %9300 = vmatmul.mubr.f32.vlgmr.msra.gmra.mrb[0].mxu0 %v6882_v59 }
 0x123   : > { %9063 = vmatpush3.msra.mxu1 %v10108_v46  ;;  %9303 = vmatpush3.msra.mxu0 %v10112_v49 }
 0x124   : > { %9064 = vmatprep.mubr.f32.mxu1 %v10070_v38  ;;  %9067 = vmatprep.subr.mxu1 %v10130_v56  ;;  %v3353_v38 = vsub.f32 %v10193_v24, %v3352_v32 }
 0x125   : > { %9304 = vmatprep.mubr.f32.mxu0 %v10073_v39  ;;  %9307 = vmatprep.subr.mxu0 %v10132_v57  ;;  %v3374_v39 = vsub.f32 %v3372_v25, %v10205_v33 }
 0x127   : > { %v3375_v22 = vand.u32 4294901760, %v3374_v39 }
 0x12a   : > { %9065 = vmatmul.mubr.f32.vlgmr.msra.gmra.mrb[0].mxu1 %v2859_v62  ;;  %9305 = vmatmul.mubr.f32.vlgmr.msra.gmra.mrb[0].mxu0 %v6883_v63 }
 0x12b   : > { %9068 = vmatpush3.msra.mxu1 %v10130_v56  ;;  %9308 = vmatpush3.msra.mxu0 %v10132_v57  ;;  %v10285_v57 = vand.u32 4294901760, %v7809_v53 }
 0x12c   : > { %9069 = vmatprep.mubr.f32.mxu1 %v10043_v26  ;;  %9072 = vmatprep.subr.mxu1 %v10108_v46 }
 0x12d   : > { %9309 = vmatprep.mubr.f32.mxu0 %v10045_v27  ;;  %9312 = vmatprep.subr.mxu0 %v10112_v49  ;;  %v7888_v61 = vsub.f32 %v7809_v53, %v10285_v57 }
 0x12f   : > { %v7889_v1 = vand.u32 4294901760, %v7888_v61 }
 0x131   : > { %v7890_v5 = vsub.f32 %v7888_v61, %v7889_v1 }
 0x132   : > { %9070 = vmatmul.mubr.f32.vlgmr.msra.gmra.mrb[0].mxu1 %v10126_v54  ;;  %9310 = vmatmul.mubr.f32.vlgmr.msra.gmra.mrb[0].mxu0 %v10128_v55 }
 0x133   : > { %9073 = vmatpush3.msra.mxu1 %v10108_v46  ;;  %9313 = vmatpush3.msra.mxu0 %v10112_v49  ;;  %v8574_v46 = vld [vmem:[%s10357_s1 + $0x38] sm:$0xff]  ;;  %v8573_v49 = vld [vmem:[%s9732_s5 + $0xe8] sm:$0xff]  ;;  %v7891_v7 = vand.u32 4294901760, %v7890_v5  ;;  %s8541_s5 = sshll.u32 %s9630_s15, 1  ;;  %s10376_s15 = smov (!%p246_p7, %s9630_s15), 3 }
 0x134   : > { %9074 = vmatprep.mubr.f32.mxu1 %v10043_v26  ;;  %9077 = vmatprep.subr.mxu1 %v10176_v12  ;;  %v3354_v26 = vand.u32 4294901760, %v3353_v38  ;;  %v10265_v48 = vand.u32 4294901760, %v8574_v46  ;;  %v3785_v52 = vsel %vm269_vm0, %v8573_v49, 0  ;;  %p237_p6 = scmp.lt.s32.totalorder %s8541_s5, 7  ;;  %s249_s30 = sadd.s32 %s8544_s29, %s10376_s15 }
 0x135   : > { %9314 = vmatprep.mubr.f32.mxu0 %v10045_v27  ;;  %9317 = vmatprep.subr.mxu0 %v10182_v16  ;;  %v3363_v27 = vsub.f32 %v10212_v36, %v10227_v40  ;;  %v10283_v56 = vand.u32 4294901760, %v3785_v52  ;;  %s250_s8 = scalar_lea.vmem %s10359_s3, %s249_s30  ;;  %s257_s11 = scalar_lea.vmem %s10360_s4, %s249_s30 }
 0x136   : > { %s10374_s5 = smov (!%p237_p6, %s8541_s5), 7 }
 0x137   : > { %v10240_v44 = vand.u32 4294901760, %v3363_v27  ;;  %v3864_v60 = vsub.f32 %v3785_v52, %v10283_v56  ;;  %s240_s24 = sadd.s32 %s8542_s23, %s10374_s5 }
 0x138   : > { %s8543_s25 = sshll.u32 %s240_s24, 3 }
 0x139   : > { %v3865_v0 = vand.u32 4294901760, %v3864_v60  ;;  %s242_s28 = scalar_lea.vmem %s10358_s2, %s8543_s25 }
 0x13a   : > { %9075 = vmatmul.mubr.f32.vlgmr.msra.gmra.mrb[0].mxu1 %v10126_v54  ;;  %9315 = vmatmul.mubr.f32.vlgmr.msra.gmra.mrb[0].mxu0 %v10128_v55  ;;  %v3875_v54 = vsub.f32 %v8574_v46, %v10265_v48  ;;  %v7899_v55 = vsub.f32 %v8606_v47, %v10269_v51 }
 0x13b   : > { %9078 = vmatpush3.msra.mxu1 %v10176_v12  ;;  %9318 = vmatpush3.msra.mxu0 %v10182_v16  ;;  %v3866_v4 = vsub.f32 %v3864_v60, %v3865_v0 }
 0x13c   : > { %9079 = vmatprep.mubr.f32.mxu1 %v3354_v26  ;;  %9082 = vmatprep.subr.mxu1 %v3375_v22  ;;  %v3876_v58 = vand.u32 4294901760, %v3875_v54  ;;  %v7900_v59 = vand.u32 4294901760, %v7899_v55 }
 0x13d   : > { %9319 = vmatprep.mubr.f32.mxu0 %v7378_v42  ;;  %9322 = vmatprep.subr.mxu0 %v7399_v18  ;;  %v3867_v6 = vand.u32 4294901760, %v3866_v4 }
 0x13e   : > { %v3877_v62 = vsub.f32 %v3875_v54, %v3876_v58  ;;  %v7901_v63 = vsub.f32 %v7899_v55, %v7900_v59 }
 0x140   : > { %v3878_v2 = vand.u32 4294901760, %v3877_v62  ;;  %v7902_v3 = vand.u32 4294901760, %v7901_v63 }
 0x142   : > { %9080 = vmatmul.mubr.f32.vlgmr.msra.gmra.mrb[0].mxu1 %v10240_v44  ;;  %9320 = vmatmul.mubr.f32.vlgmr.msra.gmra.mrb[0].mxu0 %v10242_v45 }
 0x143   : > { %9083 = vmatpush3.msra.mxu1 %v3375_v22  ;;  %9323 = vmatpush3.msra.mxu0 %v7399_v18 }
 0x144   : > { %9084 = vmatprep.mubr.f32.mxu1 %v10178_v13  ;;  %9087 = vmatprep.subr.mxu1 %v3372_v25 }
 0x145   : > { %9324 = vmatprep.mubr.f32.mxu0 %v10184_v17  ;;  %9327 = vmatprep.subr.mxu0 %v7396_v29 }
 0x14a   : > { %9085 = vmatmul.mubr.f32.vlgmr.msra.gmra.mrb[0].mxu1 %v10200_v30  ;;  %9325 = vmatmul.mubr.f32.vlgmr.msra.gmra.mrb[0].mxu0 %v10202_v31 }
 0x14b   : > { %9088 = vmatpush3.msra.mxu1 %v3372_v25  ;;  %9328 = vmatpush3.msra.mxu0 %v7396_v29 }
 0x14c   : > { %9089 = vmatprep.mubr.f32.mxu1 %v10193_v24  ;;  %9092 = vmatprep.subr.mxu1 %v10176_v12 }
 0x14d   : > { %9329 = vmatprep.mubr.f32.mxu0 %v7375_v28  ;;  %9332 = vmatprep.subr.mxu0 %v10182_v16 }
 0x152   : > { %9090 = vmatmul.mubr.f32.vlgmr.msra.gmra.mrb[0].mxu1 %v10212_v36  ;;  %9330 = vmatmul.mubr.f32.vlgmr.msra.gmra.mrb[0].mxu0 %v10215_v37 }
 0x153   : > { %9093 = vmatpush3.msra.mxu1 %v10176_v12  ;;  %9333 = vmatpush3.msra.mxu0 %v10182_v16 }
 0x154   : > { %9094 = vmatprep.mubr.f32.mxu1 %v3352_v32  ;;  %9097 = vmatprep.subr.mxu1 %v10205_v33 }
 0x155   : > { %9334 = vmatprep.mubr.f32.mxu0 %v7376_v34  ;;  %9337 = vmatprep.subr.mxu0 %v10207_v35 }
 0x15a   : > { %9095 = vmatmul.mubr.f32.vlgmr.msra.gmra.mrb[0].mxu1 %v10227_v40  ;;  %9335 = vmatmul.mubr.f32.vlgmr.msra.gmra.mrb[0].mxu0 %v10230_v41 }
 0x15b   : > { %9098 = vmatpush3.msra.mxu1 %v10205_v33  ;;  %9338 = vmatpush3.msra.mxu0 %v10207_v35 }
 0x15c   : > { %9099 = vmatprep.mubr.f32.mxu1 %v10178_v13  ;;  %9102 = vmatprep.subr.mxu1 %v10176_v12 }
 0x15d   : > { %9339 = vmatprep.mubr.f32.mxu0 %v10184_v17  ;;  %9342 = vmatprep.subr.mxu0 %v10182_v16 }
 0x162   : > { %9100 = vmatmul.mubr.f32.vlgmr.msra.gmra.mrb[0].mxu1 %v10200_v30  ;;  %9340 = vmatmul.mubr.f32.vlgmr.msra.gmra.mrb[0].mxu0 %v10202_v31 }
 0x163   : > { %9103 = vmatpush3.msra.mxu1 %v10176_v12  ;;  %9343 = vmatpush3.msra.mxu0 %v10182_v16 }
 0x164   : > { %9104 = vmatprep.mubr.f32.mxu1 %v10178_v13  ;;  %9107 = vmatprep.subr.mxu1 %v10265_v48 }
 0x165   : > { %9344 = vmatprep.mubr.f32.mxu0 %v10184_v17  ;;  %9347 = vmatprep.subr.mxu0 %v10269_v51 }
 0x16a   : > { %9105 = vmatmul.mubr.f32.vlgmr.msra.gmra.mrb[0].mxu1 %v10200_v30  ;;  %9345 = vmatmul.mubr.f32.vlgmr.msra.gmra.mrb[0].mxu0 %v10202_v31 }
 0x16b   : > { %9108 = vmatpush3.msra.mxu1 %v10265_v48  ;;  %9348 = vmatpush3.msra.mxu0 %v10269_v51 }
 0x16c   : > { %9109 = vmatprep.mubr.f32.mxu1 %v10240_v44  ;;  %9112 = vmatprep.subr.mxu1 %v3878_v2 }
 0x16d   : > { %9349 = vmatprep.mubr.f32.mxu0 %v10242_v45  ;;  %9352 = vmatprep.subr.mxu0 %v7902_v3 }
 0x172   : > { %9110 = vmatmul.mubr.f32.vlgmr.msra.gmra.mrb[0].mxu1 %v3867_v6  ;;  %9350 = vmatmul.mubr.f32.vlgmr.msra.gmra.mrb[0].mxu0 %v7891_v7 }
 0x173   : > { %9113 = vmatpush3.msra.mxu1 %v3878_v2  ;;  %9353 = vmatpush3.msra.mxu0 %v7902_v3 }
 0x174   : > { %9114 = vmatprep.mubr.f32.mxu1 %v10200_v30  ;;  %9117 = vmatprep.subr.mxu1 %v3875_v54 }
 0x175   : > { %9354 = vmatprep.mubr.f32.mxu0 %v10202_v31  ;;  %9357 = vmatprep.subr.mxu0 %v7899_v55 }
 0x17a   : > { %9115 = vmatmul.mubr.f32.vlgmr.msra.gmra.mrb[0].mxu1 %v10283_v56  ;;  %9355 = vmatmul.mubr.f32.vlgmr.msra.gmra.mrb[0].mxu0 %v10285_v57 }
 0x17b   : > { %9118 = vmatpush3.msra.mxu1 %v3875_v54  ;;  %9358 = vmatpush3.msra.mxu0 %v7899_v55 }
 0x17c   : > { %9119 = vmatprep.mubr.f32.mxu1 %v10212_v36  ;;  %9122 = vmatprep.subr.mxu1 %v10265_v48 }
 0x17d   : > { %9359 = vmatprep.mubr.f32.mxu0 %v10215_v37  ;;  %9362 = vmatprep.subr.mxu0 %v10269_v51 }
 0x182   : > { %9120 = vmatmul.mubr.f32.vlgmr.msra.gmra.mrb[0].mxu1 %v3864_v60  ;;  %9360 = vmatmul.mubr.f32.vlgmr.msra.gmra.mrb[0].mxu0 %v7888_v61 }
 0x183   : > { %9123 = vmatpush3.msra.mxu1 %v10265_v48  ;;  %9363 = vmatpush3.msra.mxu0 %v10269_v51 }
 0x184   : > { %9124 = vmatprep.mubr.f32.mxu1 %v10227_v40  ;;  %9127 = vmatprep.subr.mxu1 %v3876_v58 }
 0x185   : > { %9364 = vmatprep.mubr.f32.mxu0 %v10230_v41  ;;  %9367 = vmatprep.subr.mxu0 %v7900_v59 }
 0x18a   : > { %9125 = vmatmul.mubr.f32.vlgmr.msra.gmra.mrb[0].mxu1 %v3865_v0  ;;  %9365 = vmatmul.mubr.f32.vlgmr.msra.gmra.mrb[0].mxu0 %v7889_v1 }
 0x18b   : > { %9128 = vmatpush3.msra.mxu1 %v3876_v58  ;;  %9368 = vmatpush3.msra.mxu0 %v7900_v59 }
 0x18c   : > { %9129 = vmatprep.mubr.f32.mxu1 %v10200_v30  ;;  %9132 = vmatprep.subr.mxu1 %v10265_v48 }
 0x18d   : > { %9369 = vmatprep.mubr.f32.mxu0 %v10202_v31  ;;  %9372 = vmatprep.subr.mxu0 %v10269_v51 }
 0x192   : > { %9130 = vmatmul.mubr.f32.vlgmr.msra.gmra.mrb[0].mxu1 %v10283_v56  ;;  %9370 = vmatmul.mubr.f32.vlgmr.msra.gmra.mrb[0].mxu0 %v10285_v57 }
 0x193   : > { %9133 = vmatpush3.msra.mxu1 %v10265_v48  ;;  %9373 = vmatpush3.msra.mxu0 %v10269_v51 }
 0x194   : > { %9134 = vmatprep.mubr.f32.mxu1 %v10200_v30  ;;  %9374 = vmatprep.mubr.f32.mxu0 %v10202_v31 }
 0x19a   : > { %9135 = vmatmul.mubr.f32.vlgmr.msra.gmra.mrb[0].mxu1 %v10283_v56  ;;  %9375 = vmatmul.mubr.f32.vlgmr.msra.gmra.mrb[0].mxu0 %v10285_v57 }
 0x26d   : > { %v9136_v8 = vpop.f32.mrb[0].mxu1  ;;  %v9376_v9 = vpop.f32.mrb[0].mxu0 }
 0x26e   : > { %v9377_v10 = vadd.f32 %v9376_v9, %v9136_v8  ;;  %v4266_v11 = vpop.f32.mrb[1].mxu1  ;;  %v8290_v12 = vpop.f32.mrb[1].mxu0 }
 0x26f   : > { %v9378_v13 = vadd.f32 %v8290_v12, %v4266_v11 }
 0x270   : > { %8303 = vst [vmem:[%s242_s28 + $0x8] sm:$0xff] %v9377_v10  ;;  %v8313_v14 = vmul.f32 %v9377_v10, %v9377_v10 }
 0x271   : > { %8302 = vst [vmem:[%s242_s28] sm:$0xff] %v9378_v13  ;;  %v8304_v15 = vadd.f32 %v9378_v13, %v9377_v10  ;;  %v8312_v16 = vmul.f32 %v9378_v13, %v9378_v13 }
 0x273   : > { %v8305_v17 = vrot.slane %v8304_v15, 4  ;;  %v8314_v19 = vadd.f32 %v8313_v14, %v8312_v16 }
 0x275   : > { %v8306_v20 = vadd.f32 %v8305_v17, %v8304_v15  ;;  %v8315_v24 = vrot.slane %v8314_v19, 4 }
 0x277   : > { %v8307_v25 = vrot.slane %v8306_v20, 2  ;;  %v8316_v28 = vadd.f32 %v8315_v24, %v8314_v19 }
 0x279   : > { %v8308_v29 = vadd.f32 %v8307_v25, %v8306_v20  ;;  %v8317_v30 = vrot.slane %v8316_v28, 2 }
 0x27b   : > { %v8309_v31 = vrot.slane %v8308_v29, 1  ;;  %v8318_v32 = vadd.f32 %v8317_v30, %v8316_v28 }
 0x27d   : > { %v8310_v33 = vadd.f32 %v8309_v31, %v8308_v29  ;;  %v8319_v34 = vrot.slane %v8318_v32, 1 }
 0x27f   : > { %8311 = vst [vmem:[%s250_s8] sm:$0x1] %v8310_v33  ;;  %v8320_v35 = vadd.f32 %v8319_v34, %v8318_v32 }
 0x281   : > { %8321 = vst [vmem:[%s257_s11] sm:$0x1] %v8320_v35 }
 0x282 PF: > { %s15_s19 = sadd.s32 1, %s9646_s19   ;;  %s10361_s15 = smov %s9638_s17 }
 0x283   : > { %p12_p8 = scmp.ge.s32.totalorder %s15_s19, 10   ;;  %s10362_s16 = smov %s9642_s18 }
 0x284   : > { %s10363_s17 = smov %s10366_s20  ;;  %s10364_s18 = smov %s10370_s21 }
 0x285   :  { %14 = sbr.rel (!%p12_p8) target bundleno = 3 (0x3), region = 113 }

</bundles_post_ra>
